<compile_context>
chip_gen: v6e
topology: v6e:2x2x1
jax: 0.10.0
libtpu: 0.0.40
codegen_flags: <defaults>
</compile_context>

<pallas_src>
import math
from functools import partial
from typing import NamedTuple

import jax
import jax.numpy as jnp
from jax.experimental import pallas as pl
from jax.experimental.pallas import tpu as pltpu  # noqa: F401  (TPU-specific tuning hooks)

CFG = dict(
    tokens_per_block=4,
    max_blocks=2,
    max_tokens=8,          # tokens_per_block * max_blocks
    embed_dim=32,
    num_layers=2,
    num_heads=2,
    obs_vocab_size=16,
    act_vocab_size=4,
)

LN_EPS = 1e-5
OUT_LANES = 128            # lane-dense fused output width: [x_final (D) | head logits (128-D)]


def _layer_norm(v, w, b):
    mu = jnp.mean(v, axis=-1, keepdims=True)
    c = v - mu
    var = jnp.mean(c * c, axis=-1, keepdims=True)
    return c * jax.lax.rsqrt(var + LN_EPS) * w + b


def _mod(a, n):
    # power-of-two fast path (pure VPU bitwise op); generic int remainder otherwise
    if (n & (n - 1)) == 0:
        return jnp.bitwise_and(a, n - 1)
    return a % n


def _div(a, n):
    if (n & (n - 1)) == 0:
        return jax.lax.shift_right_logical(a, jnp.int32(n.bit_length() - 1))
    return a // n


# ---------------------------- the fused Pallas kernel ---------------------------------

def _world_model_kernel(tok_ref, qkv_ref, fc1_ref, dcol_ref, head_ref, o_ref, *,
                        num_layers, num_heads, seq_len, tokens_per_block,
                        obs_vocab, act_vocab, max_tokens):
    """Entire WorldModel forward for all batch elements in one invocation.

    tok_ref : (B*T, 1) int32   token ids (batch folded onto sublanes)
    qkv_ref : (L*3*H, D+1, hd) per-head Q/K/V weights; row D = bias
    fc1_ref : (L, D+1, 4D)     MLP-up weight; row D = bias
    dcol_ref: (R, D)           rows = [obs|act|pos embeddings (V) |
                                       per-layer/per-head Wo (L*H*hd) |
                                       per-layer MLP-down (L*4D) |
                                       per-layer {ln1_w,ln1_b,ln2_w,ln2_b,b_o,b_fc2} (6L) |
                                       ln_f weight, ln_f bias (2)]
    head_ref: (4D+2, 3D)       rows = [head W1 (D) | b1 (1) | block-diag W2 (3D) | b2 (1)]
    o_ref   : (B*T, 128)       [ x_after_final_LN (D) | obs|rew|end logits (zero-padded) ]
    """
    BT = o_ref.shape[0]
    D = dcol_ref.shape[1]
    hd = D // num_heads
    scale = 1.0 / math.sqrt(hd)
    V = obs_vocab + act_vocab + max_tokens

    # static row offsets inside the lane-D parameter slab
    WO_OFF = V
    FC2_OFF = WO_OFF + num_layers * num_heads * hd       # == WO_OFF + L*D
    SM_OFF = FC2_OFF + num_layers * 4 * D
    LNF_OFF = SM_OFF + 6 * num_layers

    # ---- fused embedder: "two-hot" (token row + position row) @ packed embedding table ----
    tok = tok_ref[...]                                              # (BT, 1) int32
    r = jax.lax.broadcasted_iota(jnp.int32, (BT, 1), 0)
    t = _mod(r, seq_len)                                            # position within sequence
    is_act = _mod(t, tokens_per_block) == (tokens_per_block - 1)    # act_tokens_pattern
    idx_tok = jnp.where(is_act, obs_vocab + jnp.minimum(tok, act_vocab - 1), tok)
    idx_pos = (obs_vocab + act_vocab) + t
    col = jax.lax.broadcasted_iota(jnp.int32, (BT, V), 1)
    twohot = ((col == idx_tok) | (col == idx_pos)).astype(jnp.float32)
    x = jnp.dot(twohot, dcol_ref[0:V, :], preferred_element_type=jnp.float32)   # (BT, D)

    # Block-diagonal causal mask: row/col = b*T + t; attend iff same batch and t_k <= t_q.
    rows = jax.lax.broadcasted_iota(jnp.int32, (BT, BT), 0)
    cols = jax.lax.broadcasted_iota(jnp.int32, (BT, BT), 1)
    mask = (_div(rows, seq_len) == _div(cols, seq_len)) & (rows >= cols)

    for l in range(num_layers):                          # static unroll (num_layers=2)
        sm = SM_OFF + 6 * l
        ln1_w = dcol_ref[sm + 0:sm + 1, :]
        ln1_b = dcol_ref[sm + 1:sm + 2, :]
        ln2_w = dcol_ref[sm + 2:sm + 3, :]
        ln2_b = dcol_ref[sm + 3:sm + 4, :]
        b_o = dcol_ref[sm + 4:sm + 5, :]
        b_fc2 = dcol_ref[sm + 5:sm + 6, :]

        # --- pre-LN causal self-attention: per-head MXU dots, no lane slicing / concat ---
        h = _layer_norm(x, ln1_w, ln1_b)
        attn_out = None
        for hh in range(num_heads):                      # static unroll (num_heads=2)
            def proj(j, _l=l, _h=hh):
                k_idx = (_l * 3 + j) * num_heads + _h
                w = qkv_ref[k_idx, 0:D, :]               # (D, hd) static ref view
                b = qkv_ref[k_idx, D:D + 1, :]           # (1, hd)
                return jnp.dot(h, w, preferred_element_type=jnp.float32) + b
            qh, kh, vh = proj(0), proj(1), proj(2)
            s = jax.lax.dot_general(qh, kh, (((1,), (1,)), ((), ())),
                                    preferred_element_type=jnp.float32) * scale
            s = jnp.where(mask, s, -1e30)
            s = s - jnp.max(s, axis=-1, keepdims=True)
            p = jnp.exp(s)
            p = p * pl.reciprocal(jnp.sum(p, axis=-1, keepdims=True), approx=True)
            hv = jnp.dot(p, vh, preferred_element_type=jnp.float32)         # (BT, hd)
            wo_base = WO_OFF + (l * num_heads + hh) * hd
            c = jnp.dot(hv, dcol_ref[wo_base:wo_base + hd, :],
                        preferred_element_type=jnp.float32)                 # (BT, D)
            attn_out = c if attn_out is None else attn_out + c
        x = x + attn_out + b_o

        # --- pre-LN GELU MLP ---
        h2 = _layer_norm(x, ln2_w, ln2_b)
        m = (jnp.dot(h2, fc1_ref[l, 0:D, :], preferred_element_type=jnp.float32)
             + fc1_ref[l, D:D + 1, :])
        # TODO(synk): nn.GELU() default is exact (erf-based); tanh approximation used because
        # erf lowering on Mosaic is not guaranteed.
        m = jax.nn.gelu(m, approximate=True)
        fc2 = FC2_OFF + l * 4 * D
        x = x + jnp.dot(m, dcol_ref[fc2:fc2 + 4 * D, :],
                        preferred_element_type=jnp.float32) + b_fc2

    # --- final LayerNorm ---
    x = _layer_norm(x, dcol_ref[LNF_OFF:LNF_OFF + 1, :], dcol_ref[LNF_OFF + 1:LNF_OFF + 2, :])

    # --- fused heads: Linear -> ReLU -> Linear for obs / rewards / ends in two matmuls ---
    hw1 = head_ref[0:D, :]                               # (D, 3D)
    hb1 = head_ref[D:D + 1, :]
    hw2 = head_ref[D + 1:4 * D + 1, :]                   # (3D, 128-D) block-diagonal
    hb2 = head_ref[4 * D + 1:4 * D + 2, :]
    hcat = jnp.maximum(jnp.dot(x, hw1, preferred_element_type=jnp.float32) + hb1, 0.0)
    logits = jnp.dot(hcat, hw2, preferred_element_type=jnp.float32) + hb2   # (BT, 128-D)

    # two direct stores into the lane-dense output slab (no concat relayout)
    o_ref[:, 0:D] = x.astype(o_ref.dtype)
    o_ref[:, D:] = logits.astype(o_ref.dtype)


# ---------------------------- parameter packing ----------------------------------------

def pack_world_model_params(params, cfg):
    """Pack raw (PyTorch-layout) params into the few slabs the fused kernel consumes."""
    D = cfg["embed_dim"]
    H = cfg["num_heads"]
    L = cfg["num_layers"]
    hd = D // H
    layers = params["layers"]

    # qkv slab: (L*3*H, D+1, hd), index = (l*3 + j)*H + h, row D = bias
    qkv = jnp.zeros((L * 3 * H, D + 1, hd), jnp.float32)
    for l, p in enumerate(layers):
        trip = [(p["wq"], p["bq"]), (p["wk"], p["bk"]), (p["wv"], p["bv"])]
        for j, (w, b) in enumerate(trip):
            for h in range(H):
                idx = (l * 3 + j) * H + h
                qkv = qkv.at[idx, 0:D, :].set(w[:, h * hd:(h + 1) * hd])
                qkv = qkv.at[idx, D, :].set(b[0, h * hd:(h + 1) * hd])

    # fc1 slab: (L, D+1, 4D), row D = bias
    fc1 = jnp.stack([jnp.concatenate([p["w1"], p["b1"]], axis=0) for p in layers])

    # dcol slab: everything whose trailing dim is D, stacked on the sublane axis (1 DMA)
    rows = [jnp.concatenate([params["obs_emb"], params["act_emb"], params["pos_emb"]], axis=0)]
    for l, p in enumerate(layers):
        for h in range(H):
            rows.append(p["wo"][h * hd:(h + 1) * hd, :])         # (hd, D)
    for p in layers:
        rows.append(p["w2"])                                      # (4D, D)
    for p in layers:
        rows.append(jnp.concatenate([p["ln1_w"], p["ln1_b"], p["ln2_w"], p["ln2_b"],
                                     p["bo"], p["b2"]], axis=0))  # (6, D)
    rows.append(jnp.concatenate([params["ln_f_w"], params["ln_f_b"]], axis=0))  # (2, D)
    dcol = jnp.concatenate(rows, axis=0).astype(jnp.float32)

    # head slab: W1 (D,3D) | b1 (1,3D) | block-diag zero-padded W2 (3D,128-D) | b2 (1,128-D)
    heads = [params["head_obs"], params["head_rewards"], params["head_ends"]]
    W1 = jnp.concatenate([h["w1"] for h in heads], axis=1)        # (D, 3D)
    B1 = jnp.concatenate([h["b1"] for h in heads], axis=1)        # (1, 3D)
    pad_cols = OUT_LANES - D
    widths = [h["w2"].shape[1] for h in heads]
    assert sum(widths) <= pad_cols, "head logits do not fit the padded output slab"
    assert pad_cols == 3 * D, "head slab packing assumes OUT_LANES - D == 3*D"
    W2 = jnp.zeros((3 * D, pad_cols), jnp.float32)
    B2 = jnp.zeros((1, pad_cols), jnp.float32)
    r, c = 0, 0
    for h, w in zip(heads, widths):
        W2 = W2.at[r:r + D, c:c + w].set(h["w2"])
        B2 = B2.at[:, c:c + w].set(h["b2"])
        r += D
        c += w
    head = jnp.concatenate([W1, B1, W2, B2], axis=0)              # (4D+2, 3D)

    return dict(qkv=qkv, fc1=fc1, dcol=dcol, head=head)


# ---------------------------- WorldModel forward ----------------------------------------

class WorldModelOutput(NamedTuple):
    output_sequence: jnp.ndarray
    logits_observations: jnp.ndarray
    logits_rewards: jnp.ndarray
    logits_ends: jnp.ndarray


def world_model_forward(tokens, packed, cfg):
    B, T = tokens.shape
    D = cfg["embed_dim"]
    tpb = cfg["tokens_per_block"]
    assert T <= cfg["max_tokens"] and T % tpb == 0
    nblk = T // tpb
    # TODO(synk): past_keys_values (incremental-decoding KV-cache) path is not implemented;
    # only the past_keys_values=None full-sequence path is reproduced (prev_steps = 0).
    # Dropout layers in the reference are identity at inference / p=0.
    # TODO(synk): in an autoregressive rollout loop, keep the param slabs VMEM-resident across
    # calls (cross-call prefetch) to amortize per-call weight DMA + dispatch.

    kern = partial(_world_model_kernel,
                   num_layers=cfg["num_layers"], num_heads=cfg["num_heads"],
                   seq_len=T, tokens_per_block=tpb,
                   obs_vocab=cfg["obs_vocab_size"], act_vocab=cfg["act_vocab_size"],
                   max_tokens=cfg["max_tokens"])

    tok_flat = tokens.reshape(B * T, 1).astype(jnp.int32)          # batch folded onto sublanes
    fused = pl.pallas_call(
        kern,
        out_shape=jax.ShapeDtypeStruct((B * T, OUT_LANES), jnp.float32),
    )(tok_flat, packed["qkv"], packed["fc1"], packed["dcol"], packed["head"])

    fused = fused.reshape(B, nblk, tpb, OUT_LANES)
    x_seq = fused[..., :D].reshape(B, T, D)
    logit = fused[..., D:]

    nobs = cfg["obs_vocab_size"]
    # all_but_last_obs pattern: keep block positions [0 .. tpb-3] and [tpb-1] (static slices)
    obs_rows = jnp.concatenate([logit[:, :, :tpb - 2], logit[:, :, tpb - 1:]], axis=2)
    logits_observations = obs_rows[..., 0:nobs].reshape(B, nblk * (tpb - 1), nobs)
    act_rows = logit[:, :, tpb - 1]                                # act_tokens pattern
    logits_rewards = act_rows[..., nobs:nobs + 3]
    logits_ends = act_rows[..., nobs + 3:nobs + 5]
    return WorldModelOutput(x_seq, logits_observations, logits_rewards, logits_ends)


# ---------------------------- deterministic init -----------------------------------------

def init_world_model_params(key, cfg):
    D = cfg["embed_dim"]
    keys = iter(jax.random.split(key, 128))

    def nrm(shape):
        return (0.02 * jax.random.normal(next(keys), shape)).astype(jnp.float32)

    def linear(din, dout):
        return nrm((din, dout)), jnp.zeros((1, dout), jnp.float32)

    layers = []
    for _ in range(cfg["num_layers"]):
        wq, bq = linear(D, D)
        wk, bk = linear(D, D)
        wv, bv = linear(D, D)
        wo, bo = linear(D, D)
        w1, b1 = linear(D, 4 * D)
        w2, b2 = linear(4 * D, D)
        layers.append(dict(
            ln1_w=jnp.ones((1, D), jnp.float32), ln1_b=jnp.zeros((1, D), jnp.float32),
            wq=wq, bq=bq, wk=wk, bk=bk, wv=wv, bv=bv, wo=wo, bo=bo,
            ln2_w=jnp.ones((1, D), jnp.float32), ln2_b=jnp.zeros((1, D), jnp.float32),
            w1=w1, b1=b1, w2=w2, b2=b2))

    def head(dout):
        w1, b1 = linear(D, D)
        w2, b2 = linear(D, dout)
        return dict(w1=w1, b1=b1, w2=w2, b2=b2)

    return dict(
        obs_emb=nrm((cfg["obs_vocab_size"], D)),
        act_emb=nrm((cfg["act_vocab_size"], D)),
        pos_emb=nrm((cfg["max_tokens"], D)),
        layers=layers,
        ln_f_w=jnp.ones((1, D), jnp.float32),
        ln_f_b=jnp.zeros((1, D), jnp.float32),
        head_obs=head(cfg["obs_vocab_size"]),
        head_rewards=head(3),
        head_ends=head(2),
    )


if __name__ == "__main__":
    key = jax.random.PRNGKey(0)
    k_param, k_obs, k_act = jax.random.split(key, 3)
    B, T = 2, CFG["max_tokens"]
    tpb = CFG["tokens_per_block"]

    params = init_world_model_params(k_param, CFG)
    packed = pack_world_model_params(params, CFG)

    is_act = (jnp.arange(T) % tpb) == (tpb - 1)
    obs_tok = jax.random.randint(k_obs, (B, T), 0, CFG["obs_vocab_size"])
    act_tok = jax.random.randint(k_act, (B, T), 0, CFG["act_vocab_size"])
    tokens = jnp.where(is_act[None, :], act_tok, obs_tok).astype(jnp.int32)

    fwd = jax.jit(lambda tok: world_model_forward(tok, packed, CFG))
    out = fwd(tokens)
    jax.block_until_ready(out)

    assert out.output_sequence.shape == (B, T, CFG["embed_dim"])
    assert out.logits_observations.shape == (B, CFG["max_blocks"] * (tpb - 1), CFG["obs_vocab_size"])
    assert out.logits_rewards.shape == (B, CFG["max_blocks"], 3)
    assert out.logits_ends.shape == (B, CFG["max_blocks"], 2)
    assert bool(jnp.all(jnp.isfinite(out.output_sequence)))
    assert bool(jnp.all(jnp.isfinite(out.logits_observations)))
    assert bool(jnp.all(jnp.isfinite(out.logits_rewards)))
    assert bool(jnp.all(jnp.isfinite(out.logits_ends)))
    print("KERNEL_OK")
</pallas_src>

<mosaic_0001>
module attributes {stable_mosaic.version = 11 : i64} {
  func.func @_world_model_kernel(%arg0: memref<16x1xi32, #tpu.memory_space<vmem>>, %arg1: memref<12x33x16xf32, #tpu.memory_space<vmem>>, %arg2: memref<2x33x128xf32, #tpu.memory_space<vmem>>, %arg3: memref<362x32xf32, #tpu.memory_space<vmem>>, %arg4: memref<130x96xf32, #tpu.memory_space<vmem>>, %arg5: memref<16x128xf32, #tpu.memory_space<vmem>>) attributes {dimension_semantics = [], scalar_prefetch = 0 : i64, scratch_operands = 0 : i64, tpu.core_type = #tpu.core_type<tc>} {
    %c0 = arith.constant 0 : index
    %c0_0 = arith.constant 0 : index
    %0 = vector.load %arg0[%c0, %c0_0] : memref<16x1xi32, #tpu.memory_space<vmem>>, vector<16x1xi32>
    %1 = tpu.iota {dimensions = array<i32: 0>} : vector<16x1xi32>
    %c7_i32 = arith.constant 7 : i32
    %2 = vector.broadcast %c7_i32 : i32 to vector<16x1xi32>
    %3 = arith.andi %1, %2 : vector<16x1xi32>
    %c3_i32 = arith.constant 3 : i32
    %4 = vector.broadcast %c3_i32 : i32 to vector<16x1xi32>
    %5 = arith.andi %3, %4 : vector<16x1xi32>
    %c3_i32_1 = arith.constant 3 : i32
    %6 = vector.broadcast %c3_i32_1 : i32 to vector<16x1xi32>
    %7 = arith.cmpi eq, %5, %6 : vector<16x1xi32>
    %c3_i32_2 = arith.constant 3 : i32
    %8 = vector.broadcast %c3_i32_2 : i32 to vector<16x1xi32>
    %9 = arith.minsi %0, %8 : vector<16x1xi32>
    %c16_i32 = arith.constant 16 : i32
    %10 = vector.broadcast %c16_i32 : i32 to vector<16x1xi32>
    %11 = arith.addi %10, %9 : vector<16x1xi32>
    %12 = arith.select %7, %11, %0 : vector<16x1xi1>, vector<16x1xi32>
    %c20_i32 = arith.constant 20 : i32
    %13 = vector.broadcast %c20_i32 : i32 to vector<16x1xi32>
    %14 = arith.addi %13, %3 : vector<16x1xi32>
    %15 = tpu.iota {dimensions = array<i32: 1>} : vector<16x28xi32>
    %16 = vector.broadcast %12 : vector<16x1xi32> to vector<16x28xi32>
    %17 = arith.cmpi eq, %15, %16 : vector<16x28xi32>
    %18 = vector.broadcast %14 : vector<16x1xi32> to vector<16x28xi32>
    %19 = arith.cmpi eq, %15, %18 : vector<16x28xi32>
    %20 = arith.ori %17, %19 : vector<16x28xi1>
    %21 = arith.extui %20 : vector<16x28xi1> to vector<16x28xi32>
    %22 = arith.sitofp %21 : vector<16x28xi32> to vector<16x28xf32>
    %c0_3 = arith.constant 0 : index
    %c0_4 = arith.constant 0 : index
    %23 = vector.load %arg3[%c0_3, %c0_4] : memref<362x32xf32, #tpu.memory_space<vmem>>, vector<28x32xf32>
    %cst = arith.constant dense<0.000000e+00> : vector<16x32xf32>
    %24 = tpu.matmul %22, %23, %cst {dimension_numbers = #tpu.dot_dimension_numbers<[1], [0], [0], [1], [0, 0, 1, 1], [], []>} : vector<16x28xf32>, vector<28x32xf32>, vector<16x32xf32> -> vector<16x32xf32>
    %25 = tpu.iota {dimensions = array<i32: 0>} : vector<16x16xi32>
    %26 = tpu.iota {dimensions = array<i32: 1>} : vector<16x16xi32>
    %c3_i32_5 = arith.constant 3 : i32
    %27 = vector.broadcast %c3_i32_5 : i32 to vector<16x16xi32>
    %28 = arith.shrui %25, %27 : vector<16x16xi32>
    %c3_i32_6 = arith.constant 3 : i32
    %29 = vector.broadcast %c3_i32_6 : i32 to vector<16x16xi32>
    %30 = arith.shrui %26, %29 : vector<16x16xi32>
    %31 = arith.cmpi eq, %28, %30 : vector<16x16xi32>
    %32 = arith.cmpi sge, %25, %26 : vector<16x16xi32>
    %33 = arith.andi %31, %32 : vector<16x16xi1>
    %c348 = arith.constant 348 : index
    %c0_7 = arith.constant 0 : index
    %34 = vector.load %arg3[%c348, %c0_7] : memref<362x32xf32, #tpu.memory_space<vmem>>, vector<1x32xf32>
    %c349 = arith.constant 349 : index
    %c0_8 = arith.constant 0 : index
    %35 = vector.load %arg3[%c349, %c0_8] : memref<362x32xf32, #tpu.memory_space<vmem>>, vector<1x32xf32>
    %c350 = arith.constant 350 : index
    %c0_9 = arith.constant 0 : index
    %36 = vector.load %arg3[%c350, %c0_9] : memref<362x32xf32, #tpu.memory_space<vmem>>, vector<1x32xf32>
    %c351 = arith.constant 351 : index
    %c0_10 = arith.constant 0 : index
    %37 = vector.load %arg3[%c351, %c0_10] : memref<362x32xf32, #tpu.memory_space<vmem>>, vector<1x32xf32>
    %c352 = arith.constant 352 : index
    %c0_11 = arith.constant 0 : index
    %38 = vector.load %arg3[%c352, %c0_11] : memref<362x32xf32, #tpu.memory_space<vmem>>, vector<1x32xf32>
    %c353 = arith.constant 353 : index
    %c0_12 = arith.constant 0 : index
    %39 = vector.load %arg3[%c353, %c0_12] : memref<362x32xf32, #tpu.memory_space<vmem>>, vector<1x32xf32>
    %cst_13 = arith.constant dense<0.000000e+00> : vector<16xf32>
    %40 = vector.multi_reduction <add>, %24, %cst_13 [1] : vector<16x32xf32> to vector<16xf32>
    %41 = vector.shape_cast %40 : vector<16xf32> to vector<16x1xf32>
    %cst_14 = arith.constant 3.200000e+01 : f32
    %42 = vector.broadcast %cst_14 : f32 to vector<16x1xf32>
    %43 = arith.divf %41, %42 : vector<16x1xf32>
    %44 = vector.broadcast %43 : vector<16x1xf32> to vector<16x32xf32>
    %45 = arith.subf %24, %44 : vector<16x32xf32>
    %46 = arith.mulf %45, %45 : vector<16x32xf32>
    %cst_15 = arith.constant dense<0.000000e+00> : vector<16xf32>
    %47 = vector.multi_reduction <add>, %46, %cst_15 [1] : vector<16x32xf32> to vector<16xf32>
    %48 = vector.shape_cast %47 : vector<16xf32> to vector<16x1xf32>
    %cst_16 = arith.constant 3.200000e+01 : f32
    %49 = vector.broadcast %cst_16 : f32 to vector<16x1xf32>
    %50 = arith.divf %48, %49 : vector<16x1xf32>
    %cst_17 = arith.constant 9.99999974E-6 : f32
    %51 = vector.broadcast %cst_17 : f32 to vector<16x1xf32>
    %52 = arith.addf %50, %51 : vector<16x1xf32>
    %53 = math.rsqrt %52 : vector<16x1xf32>
    %54 = vector.broadcast %53 : vector<16x1xf32> to vector<16x32xf32>
    %55 = arith.mulf %45, %54 : vector<16x32xf32>
    %56 = vector.broadcast %34 : vector<1x32xf32> to vector<16x32xf32>
    %57 = arith.mulf %55, %56 : vector<16x32xf32>
    %58 = vector.broadcast %35 : vector<1x32xf32> to vector<16x32xf32>
    %59 = arith.addf %57, %58 : vector<16x32xf32>
    %c0_18 = arith.constant 0 : index
    %c0_19 = arith.constant 0 : index
    %c0_20 = arith.constant 0 : index
    %60 = vector.load %arg1[%c0_18, %c0_19, %c0_20] : memref<12x33x16xf32, #tpu.memory_space<vmem>>, vector<1x32x16xf32>
    %61 = vector.shape_cast %60 : vector<1x32x16xf32> to vector<32x16xf32>
    %c0_21 = arith.constant 0 : index
    %c32 = arith.constant 32 : index
    %c0_22 = arith.constant 0 : index
    %62 = vector.load %arg1[%c0_21, %c32, %c0_22] : memref<12x33x16xf32, #tpu.memory_space<vmem>>, vector<1x1x16xf32>
    %63 = vector.shape_cast %62 : vector<1x1x16xf32> to vector<1x16xf32>
    %cst_23 = arith.constant dense<0.000000e+00> : vector<16x16xf32>
    %64 = tpu.matmul %59, %61, %cst_23 {dimension_numbers = #tpu.dot_dimension_numbers<[1], [0], [0], [1], [0, 0, 1, 1], [], []>} : vector<16x32xf32>, vector<32x16xf32>, vector<16x16xf32> -> vector<16x16xf32>
    %65 = vector.broadcast %63 : vector<1x16xf32> to vector<16x16xf32>
    %66 = arith.addf %64, %65 : vector<16x16xf32>
    %c2 = arith.constant 2 : index
    %c0_24 = arith.constant 0 : index
    %c0_25 = arith.constant 0 : index
    %67 = vector.load %arg1[%c2, %c0_24, %c0_25] : memref<12x33x16xf32, #tpu.memory_space<vmem>>, vector<1x32x16xf32>
    %68 = vector.shape_cast %67 : vector<1x32x16xf32> to vector<32x16xf32>
    %c2_26 = arith.constant 2 : index
    %c32_27 = arith.constant 32 : index
    %c0_28 = arith.constant 0 : index
    %69 = vector.load %arg1[%c2_26, %c32_27, %c0_28] : memref<12x33x16xf32, #tpu.memory_space<vmem>>, vector<1x1x16xf32>
    %70 = vector.shape_cast %69 : vector<1x1x16xf32> to vector<1x16xf32>
    %cst_29 = arith.constant dense<0.000000e+00> : vector<16x16xf32>
    %71 = tpu.matmul %59, %68, %cst_29 {dimension_numbers = #tpu.dot_dimension_numbers<[1], [0], [0], [1], [0, 0, 1, 1], [], []>} : vector<16x32xf32>, vector<32x16xf32>, vector<16x16xf32> -> vector<16x16xf32>
    %72 = vector.broadcast %70 : vector<1x16xf32> to vector<16x16xf32>
    %73 = arith.addf %71, %72 : vector<16x16xf32>
    %c4 = arith.constant 4 : index
    %c0_30 = arith.constant 0 : index
    %c0_31 = arith.constant 0 : index
    %74 = vector.load %arg1[%c4, %c0_30, %c0_31] : memref<12x33x16xf32, #tpu.memory_space<vmem>>, vector<1x32x16xf32>
    %75 = vector.shape_cast %74 : vector<1x32x16xf32> to vector<32x16xf32>
    %c4_32 = arith.constant 4 : index
    %c32_33 = arith.constant 32 : index
    %c0_34 = arith.constant 0 : index
    %76 = vector.load %arg1[%c4_32, %c32_33, %c0_34] : memref<12x33x16xf32, #tpu.memory_space<vmem>>, vector<1x1x16xf32>
    %77 = vector.shape_cast %76 : vector<1x1x16xf32> to vector<1x16xf32>
    %cst_35 = arith.constant dense<0.000000e+00> : vector<16x16xf32>
    %78 = tpu.matmul %59, %75, %cst_35 {dimension_numbers = #tpu.dot_dimension_numbers<[1], [0], [0], [1], [0, 0, 1, 1], [], []>} : vector<16x32xf32>, vector<32x16xf32>, vector<16x16xf32> -> vector<16x16xf32>
    %79 = vector.broadcast %77 : vector<1x16xf32> to vector<16x16xf32>
    %80 = arith.addf %78, %79 : vector<16x16xf32>
    %cst_36 = arith.constant dense<0.000000e+00> : vector<16x16xf32>
    %81 = tpu.matmul %66, %73, %cst_36 {dimension_numbers = #tpu.dot_dimension_numbers<[1], [1], [0], [0], [0, 0, 1, 0], [], []>} : vector<16x16xf32>, vector<16x16xf32>, vector<16x16xf32> -> vector<16x16xf32>
    %cst_37 = arith.constant 2.500000e-01 : f32
    %82 = vector.broadcast %cst_37 : f32 to vector<16x16xf32>
    %83 = arith.mulf %81, %82 : vector<16x16xf32>
    %cst_38 = arith.constant -1.000000e+30 : f32
    %84 = vector.broadcast %cst_38 : f32 to vector<16x16xf32>
    %85 = arith.select %33, %83, %84 : vector<16x16xi1>, vector<16x16xf32>
    %cst_39 = arith.constant dense<0xFF800000> : vector<16xf32>
    %86 = vector.multi_reduction <maximumf>, %85, %cst_39 [1] : vector<16x16xf32> to vector<16xf32>
    %87 = vector.shape_cast %86 : vector<16xf32> to vector<16x1xf32>
    %88 = vector.broadcast %87 : vector<16x1xf32> to vector<16x16xf32>
    %89 = arith.subf %85, %88 : vector<16x16xf32>
    %90 = math.exp %89 : vector<16x16xf32>
    %cst_40 = arith.constant dense<0.000000e+00> : vector<16xf32>
    %91 = vector.multi_reduction <add>, %90, %cst_40 [1] : vector<16x16xf32> to vector<16xf32>
    %92 = vector.shape_cast %91 : vector<16xf32> to vector<16x1xf32>
    %93 = tpu.reciprocal %92 {approx = true} : vector<16x1xf32> -> vector<16x1xf32>
    %94 = vector.broadcast %93 : vector<16x1xf32> to vector<16x16xf32>
    %95 = arith.mulf %90, %94 : vector<16x16xf32>
    %cst_41 = arith.constant dense<0.000000e+00> : vector<16x16xf32>
    %96 = tpu.matmul %95, %80, %cst_41 {dimension_numbers = #tpu.dot_dimension_numbers<[1], [0], [0], [1], [0, 0, 1, 1], [], []>} : vector<16x16xf32>, vector<16x16xf32>, vector<16x16xf32> -> vector<16x16xf32>
    %c28 = arith.constant 28 : index
    %c0_42 = arith.constant 0 : index
    %97 = vector.load %arg3[%c28, %c0_42] : memref<362x32xf32, #tpu.memory_space<vmem>>, vector<16x32xf32>
    %cst_43 = arith.constant dense<0.000000e+00> : vector<16x32xf32>
    %98 = tpu.matmul %96, %97, %cst_43 {dimension_numbers = #tpu.dot_dimension_numbers<[1], [0], [0], [1], [0, 0, 1, 1], [], []>} : vector<16x16xf32>, vector<16x32xf32>, vector<16x32xf32> -> vector<16x32xf32>
    %c1 = arith.constant 1 : index
    %c0_44 = arith.constant 0 : index
    %c0_45 = arith.constant 0 : index
    %99 = vector.load %arg1[%c1, %c0_44, %c0_45] : memref<12x33x16xf32, #tpu.memory_space<vmem>>, vector<1x32x16xf32>
    %100 = vector.shape_cast %99 : vector<1x32x16xf32> to vector<32x16xf32>
    %c1_46 = arith.constant 1 : index
    %c32_47 = arith.constant 32 : index
    %c0_48 = arith.constant 0 : index
    %101 = vector.load %arg1[%c1_46, %c32_47, %c0_48] : memref<12x33x16xf32, #tpu.memory_space<vmem>>, vector<1x1x16xf32>
    %102 = vector.shape_cast %101 : vector<1x1x16xf32> to vector<1x16xf32>
    %cst_49 = arith.constant dense<0.000000e+00> : vector<16x16xf32>
    %103 = tpu.matmul %59, %100, %cst_49 {dimension_numbers = #tpu.dot_dimension_numbers<[1], [0], [0], [1], [0, 0, 1, 1], [], []>} : vector<16x32xf32>, vector<32x16xf32>, vector<16x16xf32> -> vector<16x16xf32>
    %104 = vector.broadcast %102 : vector<1x16xf32> to vector<16x16xf32>
    %105 = arith.addf %103, %104 : vector<16x16xf32>
    %c3 = arith.constant 3 : index
    %c0_50 = arith.constant 0 : index
    %c0_51 = arith.constant 0 : index
    %106 = vector.load %arg1[%c3, %c0_50, %c0_51] : memref<12x33x16xf32, #tpu.memory_space<vmem>>, vector<1x32x16xf32>
    %107 = vector.shape_cast %106 : vector<1x32x16xf32> to vector<32x16xf32>
    %c3_52 = arith.constant 3 : index
    %c32_53 = arith.constant 32 : index
    %c0_54 = arith.constant 0 : index
    %108 = vector.load %arg1[%c3_52, %c32_53, %c0_54] : memref<12x33x16xf32, #tpu.memory_space<vmem>>, vector<1x1x16xf32>
    %109 = vector.shape_cast %108 : vector<1x1x16xf32> to vector<1x16xf32>
    %cst_55 = arith.constant dense<0.000000e+00> : vector<16x16xf32>
    %110 = tpu.matmul %59, %107, %cst_55 {dimension_numbers = #tpu.dot_dimension_numbers<[1], [0], [0], [1], [0, 0, 1, 1], [], []>} : vector<16x32xf32>, vector<32x16xf32>, vector<16x16xf32> -> vector<16x16xf32>
    %111 = vector.broadcast %109 : vector<1x16xf32> to vector<16x16xf32>
    %112 = arith.addf %110, %111 : vector<16x16xf32>
    %c5 = arith.constant 5 : index
    %c0_56 = arith.constant 0 : index
    %c0_57 = arith.constant 0 : index
    %113 = vector.load %arg1[%c5, %c0_56, %c0_57] : memref<12x33x16xf32, #tpu.memory_space<vmem>>, vector<1x32x16xf32>
    %114 = vector.shape_cast %113 : vector<1x32x16xf32> to vector<32x16xf32>
    %c5_58 = arith.constant 5 : index
    %c32_59 = arith.constant 32 : index
    %c0_60 = arith.constant 0 : index
    %115 = vector.load %arg1[%c5_58, %c32_59, %c0_60] : memref<12x33x16xf32, #tpu.memory_space<vmem>>, vector<1x1x16xf32>
    %116 = vector.shape_cast %115 : vector<1x1x16xf32> to vector<1x16xf32>
    %cst_61 = arith.constant dense<0.000000e+00> : vector<16x16xf32>
    %117 = tpu.matmul %59, %114, %cst_61 {dimension_numbers = #tpu.dot_dimension_numbers<[1], [0], [0], [1], [0, 0, 1, 1], [], []>} : vector<16x32xf32>, vector<32x16xf32>, vector<16x16xf32> -> vector<16x16xf32>
    %118 = vector.broadcast %116 : vector<1x16xf32> to vector<16x16xf32>
    %119 = arith.addf %117, %118 : vector<16x16xf32>
    %cst_62 = arith.constant dense<0.000000e+00> : vector<16x16xf32>
    %120 = tpu.matmul %105, %112, %cst_62 {dimension_numbers = #tpu.dot_dimension_numbers<[1], [1], [0], [0], [0, 0, 1, 0], [], []>} : vector<16x16xf32>, vector<16x16xf32>, vector<16x16xf32> -> vector<16x16xf32>
    %cst_63 = arith.constant 2.500000e-01 : f32
    %121 = vector.broadcast %cst_63 : f32 to vector<16x16xf32>
    %122 = arith.mulf %120, %121 : vector<16x16xf32>
    %cst_64 = arith.constant -1.000000e+30 : f32
    %123 = vector.broadcast %cst_64 : f32 to vector<16x16xf32>
    %124 = arith.select %33, %122, %123 : vector<16x16xi1>, vector<16x16xf32>
    %cst_65 = arith.constant dense<0xFF800000> : vector<16xf32>
    %125 = vector.multi_reduction <maximumf>, %124, %cst_65 [1] : vector<16x16xf32> to vector<16xf32>
    %126 = vector.shape_cast %125 : vector<16xf32> to vector<16x1xf32>
    %127 = vector.broadcast %126 : vector<16x1xf32> to vector<16x16xf32>
    %128 = arith.subf %124, %127 : vector<16x16xf32>
    %129 = math.exp %128 : vector<16x16xf32>
    %cst_66 = arith.constant dense<0.000000e+00> : vector<16xf32>
    %130 = vector.multi_reduction <add>, %129, %cst_66 [1] : vector<16x16xf32> to vector<16xf32>
    %131 = vector.shape_cast %130 : vector<16xf32> to vector<16x1xf32>
    %132 = tpu.reciprocal %131 {approx = true} : vector<16x1xf32> -> vector<16x1xf32>
    %133 = vector.broadcast %132 : vector<16x1xf32> to vector<16x16xf32>
    %134 = arith.mulf %129, %133 : vector<16x16xf32>
    %cst_67 = arith.constant dense<0.000000e+00> : vector<16x16xf32>
    %135 = tpu.matmul %134, %119, %cst_67 {dimension_numbers = #tpu.dot_dimension_numbers<[1], [0], [0], [1], [0, 0, 1, 1], [], []>} : vector<16x16xf32>, vector<16x16xf32>, vector<16x16xf32> -> vector<16x16xf32>
    %c44 = arith.constant 44 : index
    %c0_68 = arith.constant 0 : index
    %136 = vector.load %arg3[%c44, %c0_68] : memref<362x32xf32, #tpu.memory_space<vmem>>, vector<16x32xf32>
    %cst_69 = arith.constant dense<0.000000e+00> : vector<16x32xf32>
    %137 = tpu.matmul %135, %136, %cst_69 {dimension_numbers = #tpu.dot_dimension_numbers<[1], [0], [0], [1], [0, 0, 1, 1], [], []>} : vector<16x16xf32>, vector<16x32xf32>, vector<16x32xf32> -> vector<16x32xf32>
    %138 = arith.addf %98, %137 : vector<16x32xf32>
    %139 = arith.addf %24, %138 : vector<16x32xf32>
    %140 = vector.broadcast %38 : vector<1x32xf32> to vector<16x32xf32>
    %141 = arith.addf %139, %140 : vector<16x32xf32>
    %cst_70 = arith.constant dense<0.000000e+00> : vector<16xf32>
    %142 = vector.multi_reduction <add>, %141, %cst_70 [1] : vector<16x32xf32> to vector<16xf32>
    %143 = vector.shape_cast %142 : vector<16xf32> to vector<16x1xf32>
    %cst_71 = arith.constant 3.200000e+01 : f32
    %144 = vector.broadcast %cst_71 : f32 to vector<16x1xf32>
    %145 = arith.divf %143, %144 : vector<16x1xf32>
    %146 = vector.broadcast %145 : vector<16x1xf32> to vector<16x32xf32>
    %147 = arith.subf %141, %146 : vector<16x32xf32>
    %148 = arith.mulf %147, %147 : vector<16x32xf32>
    %cst_72 = arith.constant dense<0.000000e+00> : vector<16xf32>
    %149 = vector.multi_reduction <add>, %148, %cst_72 [1] : vector<16x32xf32> to vector<16xf32>
    %150 = vector.shape_cast %149 : vector<16xf32> to vector<16x1xf32>
    %cst_73 = arith.constant 3.200000e+01 : f32
    %151 = vector.broadcast %cst_73 : f32 to vector<16x1xf32>
    %152 = arith.divf %150, %151 : vector<16x1xf32>
    %cst_74 = arith.constant 9.99999974E-6 : f32
    %153 = vector.broadcast %cst_74 : f32 to vector<16x1xf32>
    %154 = arith.addf %152, %153 : vector<16x1xf32>
    %155 = math.rsqrt %154 : vector<16x1xf32>
    %156 = vector.broadcast %155 : vector<16x1xf32> to vector<16x32xf32>
    %157 = arith.mulf %147, %156 : vector<16x32xf32>
    %158 = vector.broadcast %36 : vector<1x32xf32> to vector<16x32xf32>
    %159 = arith.mulf %157, %158 : vector<16x32xf32>
    %160 = vector.broadcast %37 : vector<1x32xf32> to vector<16x32xf32>
    %161 = arith.addf %159, %160 : vector<16x32xf32>
    %c0_75 = arith.constant 0 : index
    %c0_76 = arith.constant 0 : index
    %c0_77 = arith.constant 0 : index
    %162 = vector.load %arg2[%c0_75, %c0_76, %c0_77] : memref<2x33x128xf32, #tpu.memory_space<vmem>>, vector<1x32x128xf32>
    %163 = vector.shape_cast %162 : vector<1x32x128xf32> to vector<32x128xf32>
    %cst_78 = arith.constant dense<0.000000e+00> : vector<16x128xf32>
    %164 = tpu.matmul %161, %163, %cst_78 {dimension_numbers = #tpu.dot_dimension_numbers<[1], [0], [0], [1], [0, 0, 1, 1], [], []>} : vector<16x32xf32>, vector<32x128xf32>, vector<16x128xf32> -> vector<16x128xf32>
    %c0_79 = arith.constant 0 : index
    %c32_80 = arith.constant 32 : index
    %c0_81 = arith.constant 0 : index
    %165 = vector.load %arg2[%c0_79, %c32_80, %c0_81] : memref<2x33x128xf32, #tpu.memory_space<vmem>>, vector<1x1x128xf32>
    %166 = vector.shape_cast %165 : vector<1x1x128xf32> to vector<1x128xf32>
    %167 = vector.broadcast %166 : vector<1x128xf32> to vector<16x128xf32>
    %168 = arith.addf %164, %167 : vector<16x128xf32>
    %169 = arith.mulf %168, %168 : vector<16x128xf32>
    %170 = arith.mulf %168, %169 : vector<16x128xf32>
    %cst_82 = arith.constant 4.471500e-02 : f32
    %171 = vector.broadcast %cst_82 : f32 to vector<16x128xf32>
    %172 = arith.mulf %171, %170 : vector<16x128xf32>
    %173 = arith.addf %168, %172 : vector<16x128xf32>
    %cst_83 = arith.constant 0.797884583 : f32
    %174 = vector.broadcast %cst_83 : f32 to vector<16x128xf32>
    %175 = arith.mulf %174, %173 : vector<16x128xf32>
    %176 = math.tanh %175 : vector<16x128xf32>
    %cst_84 = arith.constant 1.000000e+00 : f32
    %177 = vector.broadcast %cst_84 : f32 to vector<16x128xf32>
    %178 = arith.addf %177, %176 : vector<16x128xf32>
    %cst_85 = arith.constant 5.000000e-01 : f32
    %179 = vector.broadcast %cst_85 : f32 to vector<16x128xf32>
    %180 = arith.mulf %179, %178 : vector<16x128xf32>
    %181 = arith.mulf %168, %180 : vector<16x128xf32>
    %c92 = arith.constant 92 : index
    %c0_86 = arith.constant 0 : index
    %182 = vector.load %arg3[%c92, %c0_86] : memref<362x32xf32, #tpu.memory_space<vmem>>, vector<128x32xf32>
    %cst_87 = arith.constant dense<0.000000e+00> : vector<16x32xf32>
    %183 = tpu.matmul %181, %182, %cst_87 {dimension_numbers = #tpu.dot_dimension_numbers<[1], [0], [0], [1], [0, 0, 1, 1], [], []>} : vector<16x128xf32>, vector<128x32xf32>, vector<16x32xf32> -> vector<16x32xf32>
    %184 = arith.addf %141, %183 : vector<16x32xf32>
    %185 = vector.broadcast %39 : vector<1x32xf32> to vector<16x32xf32>
    %186 = arith.addf %184, %185 : vector<16x32xf32>
    %c354 = arith.constant 354 : index
    %c0_88 = arith.constant 0 : index
    %187 = vector.load %arg3[%c354, %c0_88] : memref<362x32xf32, #tpu.memory_space<vmem>>, vector<1x32xf32>
    %c355 = arith.constant 355 : index
    %c0_89 = arith.constant 0 : index
    %188 = vector.load %arg3[%c355, %c0_89] : memref<362x32xf32, #tpu.memory_space<vmem>>, vector<1x32xf32>
    %c356 = arith.constant 356 : index
    %c0_90 = arith.constant 0 : index
    %189 = vector.load %arg3[%c356, %c0_90] : memref<362x32xf32, #tpu.memory_space<vmem>>, vector<1x32xf32>
    %c357 = arith.constant 357 : index
    %c0_91 = arith.constant 0 : index
    %190 = vector.load %arg3[%c357, %c0_91] : memref<362x32xf32, #tpu.memory_space<vmem>>, vector<1x32xf32>
    %c358 = arith.constant 358 : index
    %c0_92 = arith.constant 0 : index
    %191 = vector.load %arg3[%c358, %c0_92] : memref<362x32xf32, #tpu.memory_space<vmem>>, vector<1x32xf32>
    %c359 = arith.constant 359 : index
    %c0_93 = arith.constant 0 : index
    %192 = vector.load %arg3[%c359, %c0_93] : memref<362x32xf32, #tpu.memory_space<vmem>>, vector<1x32xf32>
    %cst_94 = arith.constant dense<0.000000e+00> : vector<16xf32>
    %193 = vector.multi_reduction <add>, %186, %cst_94 [1] : vector<16x32xf32> to vector<16xf32>
    %194 = vector.shape_cast %193 : vector<16xf32> to vector<16x1xf32>
    %cst_95 = arith.constant 3.200000e+01 : f32
    %195 = vector.broadcast %cst_95 : f32 to vector<16x1xf32>
    %196 = arith.divf %194, %195 : vector<16x1xf32>
    %197 = vector.broadcast %196 : vector<16x1xf32> to vector<16x32xf32>
    %198 = arith.subf %186, %197 : vector<16x32xf32>
    %199 = arith.mulf %198, %198 : vector<16x32xf32>
    %cst_96 = arith.constant dense<0.000000e+00> : vector<16xf32>
    %200 = vector.multi_reduction <add>, %199, %cst_96 [1] : vector<16x32xf32> to vector<16xf32>
    %201 = vector.shape_cast %200 : vector<16xf32> to vector<16x1xf32>
    %cst_97 = arith.constant 3.200000e+01 : f32
    %202 = vector.broadcast %cst_97 : f32 to vector<16x1xf32>
    %203 = arith.divf %201, %202 : vector<16x1xf32>
    %cst_98 = arith.constant 9.99999974E-6 : f32
    %204 = vector.broadcast %cst_98 : f32 to vector<16x1xf32>
    %205 = arith.addf %203, %204 : vector<16x1xf32>
    %206 = math.rsqrt %205 : vector<16x1xf32>
    %207 = vector.broadcast %206 : vector<16x1xf32> to vector<16x32xf32>
    %208 = arith.mulf %198, %207 : vector<16x32xf32>
    %209 = vector.broadcast %187 : vector<1x32xf32> to vector<16x32xf32>
    %210 = arith.mulf %208, %209 : vector<16x32xf32>
    %211 = vector.broadcast %188 : vector<1x32xf32> to vector<16x32xf32>
    %212 = arith.addf %210, %211 : vector<16x32xf32>
    %c6 = arith.constant 6 : index
    %c0_99 = arith.constant 0 : index
    %c0_100 = arith.constant 0 : index
    %213 = vector.load %arg1[%c6, %c0_99, %c0_100] : memref<12x33x16xf32, #tpu.memory_space<vmem>>, vector<1x32x16xf32>
    %214 = vector.shape_cast %213 : vector<1x32x16xf32> to vector<32x16xf32>
    %c6_101 = arith.constant 6 : index
    %c32_102 = arith.constant 32 : index
    %c0_103 = arith.constant 0 : index
    %215 = vector.load %arg1[%c6_101, %c32_102, %c0_103] : memref<12x33x16xf32, #tpu.memory_space<vmem>>, vector<1x1x16xf32>
    %216 = vector.shape_cast %215 : vector<1x1x16xf32> to vector<1x16xf32>
    %cst_104 = arith.constant dense<0.000000e+00> : vector<16x16xf32>
    %217 = tpu.matmul %212, %214, %cst_104 {dimension_numbers = #tpu.dot_dimension_numbers<[1], [0], [0], [1], [0, 0, 1, 1], [], []>} : vector<16x32xf32>, vector<32x16xf32>, vector<16x16xf32> -> vector<16x16xf32>
    %218 = vector.broadcast %216 : vector<1x16xf32> to vector<16x16xf32>
    %219 = arith.addf %217, %218 : vector<16x16xf32>
    %c8 = arith.constant 8 : index
    %c0_105 = arith.constant 0 : index
    %c0_106 = arith.constant 0 : index
    %220 = vector.load %arg1[%c8, %c0_105, %c0_106] : memref<12x33x16xf32, #tpu.memory_space<vmem>>, vector<1x32x16xf32>
    %221 = vector.shape_cast %220 : vector<1x32x16xf32> to vector<32x16xf32>
    %c8_107 = arith.constant 8 : index
    %c32_108 = arith.constant 32 : index
    %c0_109 = arith.constant 0 : index
    %222 = vector.load %arg1[%c8_107, %c32_108, %c0_109] : memref<12x33x16xf32, #tpu.memory_space<vmem>>, vector<1x1x16xf32>
    %223 = vector.shape_cast %222 : vector<1x1x16xf32> to vector<1x16xf32>
    %cst_110 = arith.constant dense<0.000000e+00> : vector<16x16xf32>
    %224 = tpu.matmul %212, %221, %cst_110 {dimension_numbers = #tpu.dot_dimension_numbers<[1], [0], [0], [1], [0, 0, 1, 1], [], []>} : vector<16x32xf32>, vector<32x16xf32>, vector<16x16xf32> -> vector<16x16xf32>
    %225 = vector.broadcast %223 : vector<1x16xf32> to vector<16x16xf32>
    %226 = arith.addf %224, %225 : vector<16x16xf32>
    %c10 = arith.constant 10 : index
    %c0_111 = arith.constant 0 : index
    %c0_112 = arith.constant 0 : index
    %227 = vector.load %arg1[%c10, %c0_111, %c0_112] : memref<12x33x16xf32, #tpu.memory_space<vmem>>, vector<1x32x16xf32>
    %228 = vector.shape_cast %227 : vector<1x32x16xf32> to vector<32x16xf32>
    %c10_113 = arith.constant 10 : index
    %c32_114 = arith.constant 32 : index
    %c0_115 = arith.constant 0 : index
    %229 = vector.load %arg1[%c10_113, %c32_114, %c0_115] : memref<12x33x16xf32, #tpu.memory_space<vmem>>, vector<1x1x16xf32>
    %230 = vector.shape_cast %229 : vector<1x1x16xf32> to vector<1x16xf32>
    %cst_116 = arith.constant dense<0.000000e+00> : vector<16x16xf32>
    %231 = tpu.matmul %212, %228, %cst_116 {dimension_numbers = #tpu.dot_dimension_numbers<[1], [0], [0], [1], [0, 0, 1, 1], [], []>} : vector<16x32xf32>, vector<32x16xf32>, vector<16x16xf32> -> vector<16x16xf32>
    %232 = vector.broadcast %230 : vector<1x16xf32> to vector<16x16xf32>
    %233 = arith.addf %231, %232 : vector<16x16xf32>
    %cst_117 = arith.constant dense<0.000000e+00> : vector<16x16xf32>
    %234 = tpu.matmul %219, %226, %cst_117 {dimension_numbers = #tpu.dot_dimension_numbers<[1], [1], [0], [0], [0, 0, 1, 0], [], []>} : vector<16x16xf32>, vector<16x16xf32>, vector<16x16xf32> -> vector<16x16xf32>
    %cst_118 = arith.constant 2.500000e-01 : f32
    %235 = vector.broadcast %cst_118 : f32 to vector<16x16xf32>
    %236 = arith.mulf %234, %235 : vector<16x16xf32>
    %cst_119 = arith.constant -1.000000e+30 : f32
    %237 = vector.broadcast %cst_119 : f32 to vector<16x16xf32>
    %238 = arith.select %33, %236, %237 : vector<16x16xi1>, vector<16x16xf32>
    %cst_120 = arith.constant dense<0xFF800000> : vector<16xf32>
    %239 = vector.multi_reduction <maximumf>, %238, %cst_120 [1] : vector<16x16xf32> to vector<16xf32>
    %240 = vector.shape_cast %239 : vector<16xf32> to vector<16x1xf32>
    %241 = vector.broadcast %240 : vector<16x1xf32> to vector<16x16xf32>
    %242 = arith.subf %238, %241 : vector<16x16xf32>
    %243 = math.exp %242 : vector<16x16xf32>
    %cst_121 = arith.constant dense<0.000000e+00> : vector<16xf32>
    %244 = vector.multi_reduction <add>, %243, %cst_121 [1] : vector<16x16xf32> to vector<16xf32>
    %245 = vector.shape_cast %244 : vector<16xf32> to vector<16x1xf32>
    %246 = tpu.reciprocal %245 {approx = true} : vector<16x1xf32> -> vector<16x1xf32>
    %247 = vector.broadcast %246 : vector<16x1xf32> to vector<16x16xf32>
    %248 = arith.mulf %243, %247 : vector<16x16xf32>
    %cst_122 = arith.constant dense<0.000000e+00> : vector<16x16xf32>
    %249 = tpu.matmul %248, %233, %cst_122 {dimension_numbers = #tpu.dot_dimension_numbers<[1], [0], [0], [1], [0, 0, 1, 1], [], []>} : vector<16x16xf32>, vector<16x16xf32>, vector<16x16xf32> -> vector<16x16xf32>
    %c60 = arith.constant 60 : index
    %c0_123 = arith.constant 0 : index
    %250 = vector.load %arg3[%c60, %c0_123] : memref<362x32xf32, #tpu.memory_space<vmem>>, vector<16x32xf32>
    %cst_124 = arith.constant dense<0.000000e+00> : vector<16x32xf32>
    %251 = tpu.matmul %249, %250, %cst_124 {dimension_numbers = #tpu.dot_dimension_numbers<[1], [0], [0], [1], [0, 0, 1, 1], [], []>} : vector<16x16xf32>, vector<16x32xf32>, vector<16x32xf32> -> vector<16x32xf32>
    %c7 = arith.constant 7 : index
    %c0_125 = arith.constant 0 : index
    %c0_126 = arith.constant 0 : index
    %252 = vector.load %arg1[%c7, %c0_125, %c0_126] : memref<12x33x16xf32, #tpu.memory_space<vmem>>, vector<1x32x16xf32>
    %253 = vector.shape_cast %252 : vector<1x32x16xf32> to vector<32x16xf32>
    %c7_127 = arith.constant 7 : index
    %c32_128 = arith.constant 32 : index
    %c0_129 = arith.constant 0 : index
    %254 = vector.load %arg1[%c7_127, %c32_128, %c0_129] : memref<12x33x16xf32, #tpu.memory_space<vmem>>, vector<1x1x16xf32>
    %255 = vector.shape_cast %254 : vector<1x1x16xf32> to vector<1x16xf32>
    %cst_130 = arith.constant dense<0.000000e+00> : vector<16x16xf32>
    %256 = tpu.matmul %212, %253, %cst_130 {dimension_numbers = #tpu.dot_dimension_numbers<[1], [0], [0], [1], [0, 0, 1, 1], [], []>} : vector<16x32xf32>, vector<32x16xf32>, vector<16x16xf32> -> vector<16x16xf32>
    %257 = vector.broadcast %255 : vector<1x16xf32> to vector<16x16xf32>
    %258 = arith.addf %256, %257 : vector<16x16xf32>
    %c9 = arith.constant 9 : index
    %c0_131 = arith.constant 0 : index
    %c0_132 = arith.constant 0 : index
    %259 = vector.load %arg1[%c9, %c0_131, %c0_132] : memref<12x33x16xf32, #tpu.memory_space<vmem>>, vector<1x32x16xf32>
    %260 = vector.shape_cast %259 : vector<1x32x16xf32> to vector<32x16xf32>
    %c9_133 = arith.constant 9 : index
    %c32_134 = arith.constant 32 : index
    %c0_135 = arith.constant 0 : index
    %261 = vector.load %arg1[%c9_133, %c32_134, %c0_135] : memref<12x33x16xf32, #tpu.memory_space<vmem>>, vector<1x1x16xf32>
    %262 = vector.shape_cast %261 : vector<1x1x16xf32> to vector<1x16xf32>
    %cst_136 = arith.constant dense<0.000000e+00> : vector<16x16xf32>
    %263 = tpu.matmul %212, %260, %cst_136 {dimension_numbers = #tpu.dot_dimension_numbers<[1], [0], [0], [1], [0, 0, 1, 1], [], []>} : vector<16x32xf32>, vector<32x16xf32>, vector<16x16xf32> -> vector<16x16xf32>
    %264 = vector.broadcast %262 : vector<1x16xf32> to vector<16x16xf32>
    %265 = arith.addf %263, %264 : vector<16x16xf32>
    %c11 = arith.constant 11 : index
    %c0_137 = arith.constant 0 : index
    %c0_138 = arith.constant 0 : index
    %266 = vector.load %arg1[%c11, %c0_137, %c0_138] : memref<12x33x16xf32, #tpu.memory_space<vmem>>, vector<1x32x16xf32>
    %267 = vector.shape_cast %266 : vector<1x32x16xf32> to vector<32x16xf32>
    %c11_139 = arith.constant 11 : index
    %c32_140 = arith.constant 32 : index
    %c0_141 = arith.constant 0 : index
    %268 = vector.load %arg1[%c11_139, %c32_140, %c0_141] : memref<12x33x16xf32, #tpu.memory_space<vmem>>, vector<1x1x16xf32>
    %269 = vector.shape_cast %268 : vector<1x1x16xf32> to vector<1x16xf32>
    %cst_142 = arith.constant dense<0.000000e+00> : vector<16x16xf32>
    %270 = tpu.matmul %212, %267, %cst_142 {dimension_numbers = #tpu.dot_dimension_numbers<[1], [0], [0], [1], [0, 0, 1, 1], [], []>} : vector<16x32xf32>, vector<32x16xf32>, vector<16x16xf32> -> vector<16x16xf32>
    %271 = vector.broadcast %269 : vector<1x16xf32> to vector<16x16xf32>
    %272 = arith.addf %270, %271 : vector<16x16xf32>
    %cst_143 = arith.constant dense<0.000000e+00> : vector<16x16xf32>
    %273 = tpu.matmul %258, %265, %cst_143 {dimension_numbers = #tpu.dot_dimension_numbers<[1], [1], [0], [0], [0, 0, 1, 0], [], []>} : vector<16x16xf32>, vector<16x16xf32>, vector<16x16xf32> -> vector<16x16xf32>
    %cst_144 = arith.constant 2.500000e-01 : f32
    %274 = vector.broadcast %cst_144 : f32 to vector<16x16xf32>
    %275 = arith.mulf %273, %274 : vector<16x16xf32>
    %cst_145 = arith.constant -1.000000e+30 : f32
    %276 = vector.broadcast %cst_145 : f32 to vector<16x16xf32>
    %277 = arith.select %33, %275, %276 : vector<16x16xi1>, vector<16x16xf32>
    %cst_146 = arith.constant dense<0xFF800000> : vector<16xf32>
    %278 = vector.multi_reduction <maximumf>, %277, %cst_146 [1] : vector<16x16xf32> to vector<16xf32>
    %279 = vector.shape_cast %278 : vector<16xf32> to vector<16x1xf32>
    %280 = vector.broadcast %279 : vector<16x1xf32> to vector<16x16xf32>
    %281 = arith.subf %277, %280 : vector<16x16xf32>
    %282 = math.exp %281 : vector<16x16xf32>
    %cst_147 = arith.constant dense<0.000000e+00> : vector<16xf32>
    %283 = vector.multi_reduction <add>, %282, %cst_147 [1] : vector<16x16xf32> to vector<16xf32>
    %284 = vector.shape_cast %283 : vector<16xf32> to vector<16x1xf32>
    %285 = tpu.reciprocal %284 {approx = true} : vector<16x1xf32> -> vector<16x1xf32>
    %286 = vector.broadcast %285 : vector<16x1xf32> to vector<16x16xf32>
    %287 = arith.mulf %282, %286 : vector<16x16xf32>
    %cst_148 = arith.constant dense<0.000000e+00> : vector<16x16xf32>
    %288 = tpu.matmul %287, %272, %cst_148 {dimension_numbers = #tpu.dot_dimension_numbers<[1], [0], [0], [1], [0, 0, 1, 1], [], []>} : vector<16x16xf32>, vector<16x16xf32>, vector<16x16xf32> -> vector<16x16xf32>
    %c76 = arith.constant 76 : index
    %c0_149 = arith.constant 0 : index
    %289 = vector.load %arg3[%c76, %c0_149] : memref<362x32xf32, #tpu.memory_space<vmem>>, vector<16x32xf32>
    %cst_150 = arith.constant dense<0.000000e+00> : vector<16x32xf32>
    %290 = tpu.matmul %288, %289, %cst_150 {dimension_numbers = #tpu.dot_dimension_numbers<[1], [0], [0], [1], [0, 0, 1, 1], [], []>} : vector<16x16xf32>, vector<16x32xf32>, vector<16x32xf32> -> vector<16x32xf32>
    %291 = arith.addf %251, %290 : vector<16x32xf32>
    %292 = arith.addf %186, %291 : vector<16x32xf32>
    %293 = vector.broadcast %191 : vector<1x32xf32> to vector<16x32xf32>
    %294 = arith.addf %292, %293 : vector<16x32xf32>
    %cst_151 = arith.constant dense<0.000000e+00> : vector<16xf32>
    %295 = vector.multi_reduction <add>, %294, %cst_151 [1] : vector<16x32xf32> to vector<16xf32>
    %296 = vector.shape_cast %295 : vector<16xf32> to vector<16x1xf32>
    %cst_152 = arith.constant 3.200000e+01 : f32
    %297 = vector.broadcast %cst_152 : f32 to vector<16x1xf32>
    %298 = arith.divf %296, %297 : vector<16x1xf32>
    %299 = vector.broadcast %298 : vector<16x1xf32> to vector<16x32xf32>
    %300 = arith.subf %294, %299 : vector<16x32xf32>
    %301 = arith.mulf %300, %300 : vector<16x32xf32>
    %cst_153 = arith.constant dense<0.000000e+00> : vector<16xf32>
    %302 = vector.multi_reduction <add>, %301, %cst_153 [1] : vector<16x32xf32> to vector<16xf32>
    %303 = vector.shape_cast %302 : vector<16xf32> to vector<16x1xf32>
    %cst_154 = arith.constant 3.200000e+01 : f32
    %304 = vector.broadcast %cst_154 : f32 to vector<16x1xf32>
    %305 = arith.divf %303, %304 : vector<16x1xf32>
    %cst_155 = arith.constant 9.99999974E-6 : f32
    %306 = vector.broadcast %cst_155 : f32 to vector<16x1xf32>
    %307 = arith.addf %305, %306 : vector<16x1xf32>
    %308 = math.rsqrt %307 : vector<16x1xf32>
    %309 = vector.broadcast %308 : vector<16x1xf32> to vector<16x32xf32>
    %310 = arith.mulf %300, %309 : vector<16x32xf32>
    %311 = vector.broadcast %189 : vector<1x32xf32> to vector<16x32xf32>
    %312 = arith.mulf %310, %311 : vector<16x32xf32>
    %313 = vector.broadcast %190 : vector<1x32xf32> to vector<16x32xf32>
    %314 = arith.addf %312, %313 : vector<16x32xf32>
    %c1_156 = arith.constant 1 : index
    %c0_157 = arith.constant 0 : index
    %c0_158 = arith.constant 0 : index
    %315 = vector.load %arg2[%c1_156, %c0_157, %c0_158] : memref<2x33x128xf32, #tpu.memory_space<vmem>>, vector<1x32x128xf32>
    %316 = vector.shape_cast %315 : vector<1x32x128xf32> to vector<32x128xf32>
    %cst_159 = arith.constant dense<0.000000e+00> : vector<16x128xf32>
    %317 = tpu.matmul %314, %316, %cst_159 {dimension_numbers = #tpu.dot_dimension_numbers<[1], [0], [0], [1], [0, 0, 1, 1], [], []>} : vector<16x32xf32>, vector<32x128xf32>, vector<16x128xf32> -> vector<16x128xf32>
    %c1_160 = arith.constant 1 : index
    %c32_161 = arith.constant 32 : index
    %c0_162 = arith.constant 0 : index
    %318 = vector.load %arg2[%c1_160, %c32_161, %c0_162] : memref<2x33x128xf32, #tpu.memory_space<vmem>>, vector<1x1x128xf32>
    %319 = vector.shape_cast %318 : vector<1x1x128xf32> to vector<1x128xf32>
    %320 = vector.broadcast %319 : vector<1x128xf32> to vector<16x128xf32>
    %321 = arith.addf %317, %320 : vector<16x128xf32>
    %322 = arith.mulf %321, %321 : vector<16x128xf32>
    %323 = arith.mulf %321, %322 : vector<16x128xf32>
    %cst_163 = arith.constant 4.471500e-02 : f32
    %324 = vector.broadcast %cst_163 : f32 to vector<16x128xf32>
    %325 = arith.mulf %324, %323 : vector<16x128xf32>
    %326 = arith.addf %321, %325 : vector<16x128xf32>
    %cst_164 = arith.constant 0.797884583 : f32
    %327 = vector.broadcast %cst_164 : f32 to vector<16x128xf32>
    %328 = arith.mulf %327, %326 : vector<16x128xf32>
    %329 = math.tanh %328 : vector<16x128xf32>
    %cst_165 = arith.constant 1.000000e+00 : f32
    %330 = vector.broadcast %cst_165 : f32 to vector<16x128xf32>
    %331 = arith.addf %330, %329 : vector<16x128xf32>
    %cst_166 = arith.constant 5.000000e-01 : f32
    %332 = vector.broadcast %cst_166 : f32 to vector<16x128xf32>
    %333 = arith.mulf %332, %331 : vector<16x128xf32>
    %334 = arith.mulf %321, %333 : vector<16x128xf32>
    %c220 = arith.constant 220 : index
    %c0_167 = arith.constant 0 : index
    %335 = vector.load %arg3[%c220, %c0_167] : memref<362x32xf32, #tpu.memory_space<vmem>>, vector<128x32xf32>
    %cst_168 = arith.constant dense<0.000000e+00> : vector<16x32xf32>
    %336 = tpu.matmul %334, %335, %cst_168 {dimension_numbers = #tpu.dot_dimension_numbers<[1], [0], [0], [1], [0, 0, 1, 1], [], []>} : vector<16x128xf32>, vector<128x32xf32>, vector<16x32xf32> -> vector<16x32xf32>
    %337 = arith.addf %294, %336 : vector<16x32xf32>
    %338 = vector.broadcast %192 : vector<1x32xf32> to vector<16x32xf32>
    %339 = arith.addf %337, %338 : vector<16x32xf32>
    %c360 = arith.constant 360 : index
    %c0_169 = arith.constant 0 : index
    %340 = vector.load %arg3[%c360, %c0_169] : memref<362x32xf32, #tpu.memory_space<vmem>>, vector<1x32xf32>
    %c361 = arith.constant 361 : index
    %c0_170 = arith.constant 0 : index
    %341 = vector.load %arg3[%c361, %c0_170] : memref<362x32xf32, #tpu.memory_space<vmem>>, vector<1x32xf32>
    %cst_171 = arith.constant dense<0.000000e+00> : vector<16xf32>
    %342 = vector.multi_reduction <add>, %339, %cst_171 [1] : vector<16x32xf32> to vector<16xf32>
    %343 = vector.shape_cast %342 : vector<16xf32> to vector<16x1xf32>
    %cst_172 = arith.constant 3.200000e+01 : f32
    %344 = vector.broadcast %cst_172 : f32 to vector<16x1xf32>
    %345 = arith.divf %343, %344 : vector<16x1xf32>
    %346 = vector.broadcast %345 : vector<16x1xf32> to vector<16x32xf32>
    %347 = arith.subf %339, %346 : vector<16x32xf32>
    %348 = arith.mulf %347, %347 : vector<16x32xf32>
    %cst_173 = arith.constant dense<0.000000e+00> : vector<16xf32>
    %349 = vector.multi_reduction <add>, %348, %cst_173 [1] : vector<16x32xf32> to vector<16xf32>
    %350 = vector.shape_cast %349 : vector<16xf32> to vector<16x1xf32>
    %cst_174 = arith.constant 3.200000e+01 : f32
    %351 = vector.broadcast %cst_174 : f32 to vector<16x1xf32>
    %352 = arith.divf %350, %351 : vector<16x1xf32>
    %cst_175 = arith.constant 9.99999974E-6 : f32
    %353 = vector.broadcast %cst_175 : f32 to vector<16x1xf32>
    %354 = arith.addf %352, %353 : vector<16x1xf32>
    %355 = math.rsqrt %354 : vector<16x1xf32>
    %356 = vector.broadcast %355 : vector<16x1xf32> to vector<16x32xf32>
    %357 = arith.mulf %347, %356 : vector<16x32xf32>
    %358 = vector.broadcast %340 : vector<1x32xf32> to vector<16x32xf32>
    %359 = arith.mulf %357, %358 : vector<16x32xf32>
    %360 = vector.broadcast %341 : vector<1x32xf32> to vector<16x32xf32>
    %361 = arith.addf %359, %360 : vector<16x32xf32>
    %c0_176 = arith.constant 0 : index
    %c0_177 = arith.constant 0 : index
    %362 = vector.load %arg4[%c0_176, %c0_177] : memref<130x96xf32, #tpu.memory_space<vmem>>, vector<32x96xf32>
    %c32_178 = arith.constant 32 : index
    %c0_179 = arith.constant 0 : index
    %363 = vector.load %arg4[%c32_178, %c0_179] : memref<130x96xf32, #tpu.memory_space<vmem>>, vector<1x96xf32>
    %c33 = arith.constant 33 : index
    %c0_180 = arith.constant 0 : index
    %364 = vector.load %arg4[%c33, %c0_180] : memref<130x96xf32, #tpu.memory_space<vmem>>, vector<96x96xf32>
    %c129 = arith.constant 129 : index
    %c0_181 = arith.constant 0 : index
    %365 = vector.load %arg4[%c129, %c0_181] : memref<130x96xf32, #tpu.memory_space<vmem>>, vector<1x96xf32>
    %cst_182 = arith.constant dense<0.000000e+00> : vector<16x96xf32>
    %366 = tpu.matmul %361, %362, %cst_182 {dimension_numbers = #tpu.dot_dimension_numbers<[1], [0], [0], [1], [0, 0, 1, 1], [], []>} : vector<16x32xf32>, vector<32x96xf32>, vector<16x96xf32> -> vector<16x96xf32>
    %367 = vector.broadcast %363 : vector<1x96xf32> to vector<16x96xf32>
    %368 = arith.addf %366, %367 : vector<16x96xf32>
    %cst_183 = arith.constant 0.000000e+00 : f32
    %369 = vector.broadcast %cst_183 : f32 to vector<16x96xf32>
    %370 = arith.maximumf %368, %369 : vector<16x96xf32>
    %cst_184 = arith.constant dense<0.000000e+00> : vector<16x96xf32>
    %371 = tpu.matmul %370, %364, %cst_184 {dimension_numbers = #tpu.dot_dimension_numbers<[1], [0], [0], [1], [0, 0, 1, 1], [], []>} : vector<16x96xf32>, vector<96x96xf32>, vector<16x96xf32> -> vector<16x96xf32>
    %372 = vector.broadcast %365 : vector<1x96xf32> to vector<16x96xf32>
    %373 = arith.addf %371, %372 : vector<16x96xf32>
    %c0_185 = arith.constant 0 : index
    %c0_186 = arith.constant 0 : index
    %374 = vector.load %arg5[%c0_185, %c0_186] : memref<16x128xf32, #tpu.memory_space<vmem>>, vector<16x32xf32>
    tpu.vector_store %arg5[%c0_185, %c0_186], %361 {strides = array<i32>} : memref<16x128xf32, #tpu.memory_space<vmem>>, vector<16x32xf32>,
    %c0_187 = arith.constant 0 : index
    %c32_188 = arith.constant 32 : index
    %375 = vector.load %arg5[%c0_187, %c32_188] : memref<16x128xf32, #tpu.memory_space<vmem>>, vector<16x96xf32>
    tpu.vector_store %arg5[%c0_187, %c32_188], %373 {strides = array<i32>} : memref<16x128xf32, #tpu.memory_space<vmem>>, vector<16x96xf32>,
    return
  }
}

</mosaic_0001>

<bundles_post_ra>
// kernel: _lambda_.1
= control target key start
LH: loop header
LB: loop body
LE: loop exit
PB: predicated region body
PF: predicated region fallthrough
CT: control target
= control target key end

     0   :  { %10 = vsyncpa [#allocation3], 0  ;;  %s4318_s0 = inlined_call_operand.vmem [shape: s32[16,1], index: 0, kind: input, shape index: {}]   ;;  %s4319_s1 = inlined_call_operand.hbm [shape: f32[12,33,16], index: 1, kind: input, shape index: {}]   ;;  %s4320_s2 = inlined_call_operand.hbm [shape: f32[2,33,128], index: 2, kind: input, shape index: {}]   ;;  %s4321_s3 = inlined_call_operand.hbm [shape: f32[362,32], index: 3, kind: input, shape index: {}]   ;;  %s4322_s4 = inlined_call_operand.hbm [shape: f32[130,96], index: 4, kind: input, shape index: {}]   ;;  %s4323_s5 = inlined_call_operand.vmem [shape: f32[16,128], index: 5, kind: output, shape index: {}]  }
   0x1   :  { %11 = vsyncpa [#allocation5], 0 }
   0x2   :  { %12 = vsyncpa [#allocation8], 0  ;;  %s4007_s18 = smov [#allocation4]   ;;  %s4008_s20 = smov [#allocation2]  }
   0x3   :  { %s32_s19 = sshll.u32 %s4007_s18, 4  ;;  %s20_s21 = sshll.u32 %s4008_s20, 4  ;;  %s33_s19 = int_to_ptr.vmem [resolvable:$true] %s32_s19  ;;  %s21_s21 = int_to_ptr.vmem [resolvable:$true] %s20_s21 }
   0x4   :  { %s3929_s22 = scalar_lea.vmem %s33_s19, 1280  ;;  %p3934_p1 = scmp.lt.s32.totalorder %s33_s19, %s33_s19 }
   0x5   :  { %p3930_p0 = scmp.ne.s32.totalorder %s33_s19, %s3929_s22  ;;  %p3935_p2 = scmp.lt.s32.totalorder %s3929_s22, %s3929_s22 }
   0x7   :  { %p3936_p3 = por %p3935_p2, %p3934_p1 }
   0x9   :  { %p3937_p4 = pnand %p3936_p3, %p3930_p0 }
   0xb   :  { %3940 = shalt.err (!%p3937_p4)
}
   0xc   :  { %s4009_s23 = smov 128   ;;  %s4010_s24 = smov 8  }
   0xd   :  { %38 = dma.hbm_to_vmem [thread:$0]  %s4320_s2, 1280, %s33_s19, [#allocation5], %s4009_s23, %s4009_s23, %s4010_s24  }
   0xe   :  { %s3949_s27 = scalar_lea.vmem %s21_s21, 7680  ;;  %p3954_p6 = scmp.lt.s32.totalorder %s21_s21, %s21_s21 }
   0xf   :  { %p3950_p5 = scmp.ne.s32.totalorder %s21_s21, %s3949_s27  ;;  %p3955_p7 = scmp.lt.s32.totalorder %s3949_s27, %s3949_s27 }
  0x11   :  { %p3956_p8 = por %p3955_p7, %p3954_p6 }
  0x13   :  { %p3957_p9 = pnand %p3956_p8, %p3950_p5 }
  0x15   :  { %3960 = shalt.err (!%p3957_p9)
}
  0x16   :  { %26 = dma.hbm_to_vmem [thread:$0]  %s4319_s1, 7680, %s21_s21, [#allocation3], %s4009_s23, %s4009_s23, %s4010_s24  }
  0x17   :  { %s4011_s30 = smov [#allocation6]   ;;  %s4012_s7 = smov [#allocation7]  }
  0x18   :  { %s44_s6 = sshll.u32 %s4011_s30, 4  ;;  %s56_s8 = sshll.u32 %s4012_s7, 4  ;;  %s45_s6 = int_to_ptr.vmem [resolvable:$true] %s44_s6  ;;  %s57_s8 = int_to_ptr.vmem [resolvable:$true] %s56_s8 }
  0x19   :  { %s3969_s2 = scalar_lea.vmem %s45_s6, 5888  ;;  %p3974_p11 = scmp.lt.s32.totalorder %s45_s6, %s45_s6 }
  0x1a   :  { %p3970_p10 = scmp.ne.s32.totalorder %s45_s6, %s3969_s2  ;;  %p3975_p12 = scmp.lt.s32.totalorder %s3969_s2, %s3969_s2 }
  0x1c   :  { %p3976_p13 = por %p3975_p12, %p3974_p11 }
  0x1e   :  { %p3977_p0 = pnand %p3976_p13, %p3970_p10 }
  0x20   :  { %3980 = shalt.err (!%p3977_p0)
}
  0x21   :  { %50 = dma.hbm_to_vmem [thread:$0]  %s4321_s3, 5888, %s45_s6, [#allocation5], %s4009_s23, %s4009_s23, %s4010_s24  }
  0x22   :  { %s3989_s1 = scalar_lea.vmem %s57_s8, 2176  ;;  %p3994_p2 = scmp.lt.s32.totalorder %s57_s8, %s57_s8 }
  0x23   :  { %p3990_p1 = scmp.ne.s32.totalorder %s57_s8, %s3989_s1  ;;  %p3995_p3 = scmp.lt.s32.totalorder %s3989_s1, %s3989_s1 }
  0x25   :  { %p3996_p4 = por %p3995_p3, %p3994_p2 }
  0x27   :  { %p3997_p5 = pnand %p3996_p4, %p3990_p1 }
  0x29   :  { %4000 = shalt.err (!%p3997_p5)
}
  0x2a   :  { %62 = dma.hbm_to_vmem [thread:$0]  %s4322_s4, 2176, %s57_s8, [#allocation8], %s4009_s23, %s4009_s23, %s4010_s24  }
  0x2b   :  { %4001 = dma.done.wait [#allocation3], 7680  }
  0x2c   :  { %4002 = vsyncadd [#allocation3], 4294959616 }
  0x2d   :  { %4003 = dma.done.wait [#allocation5], 7168  }
  0x2e   :  { %4004 = vsyncadd [#allocation5], 4294960128 }
  0x2f   :  { %4005 = dma.done.wait [#allocation8], 2176  }
  0x30   :  { %4006 = vsyncadd [#allocation8], 4294965120  ;;  %v77_v0 = vlaneseq  ;;  %v4013_v1 = vmov 0   ;;  %vm125_vm0 = vcmask 1043456   ;;  %v75_v7 = vld [vmem:[%s4318_s0] sm:$0xff]  ;;  %v76_v8 = vld [vmem:[%s4318_s0 + $0x8] sm:$0xff] }
  0x31   :  { %3860 = vset.pattern.permute.xlu0 %v4013_v1  ;;  %v117_v9 = vld [vmem:[#allocation6 + $0x18] sm:$0xf]  ;;  %vm86_vm1 = vcmp.lt.s32.totalorder %v75_v7, 3  ;;  %vm88_vm2 = vcmp.lt.s32.totalorder %v76_v8, 3  ;;  %v116_v13 = vld [vmem:[#allocation6 + $0x10] sm:$0xff]  ;;  %v115_v14 = vld [vmem:[#allocation6 + $0x8] sm:$0xff] }
  0x32   :  { %v4070_v2 = vshrl.u32 %v77_v0, 7  ;;  %3494 = vmatprep.subr.msk.mxu0 %vm125_vm0, %v117_v9  ;;  %v87_v11 = vsel %vm86_vm1, %v75_v7, 3  ;;  %v89_v12 = vsel %vm88_vm2, %v76_v8, 3  ;;  %v114_v18 = vld [vmem:[#allocation6] sm:$0xff]  ;;  %v4083_v20 = vand.u32 127, %v77_v0  ;;  %v262_v42 = vld [vmem:[#allocation2 + $0x18] sm:$0xff] }
  0x33   :  { %3495 = vmatpush3.msk.msra.mxu0 %vm125_vm0, %v117_v9  ;;  %v90_v15 = vadd.s32 16, %v87_v11  ;;  %v91_v16 = vadd.s32 16, %v89_v12  ;;  %vm118_vm7 = vcmask 228352   ;;  %v4014_v24 = vmov 0.0   ;;  %3505 = vmatprep.subr.mxu1 %v262_v42  ;;  %v353_v43 = vld [vmem:[#allocation2 + $0x68] sm:$0xff]  ;;  %v261_v44 = vld [vmem:[#allocation2 + $0x10] sm:$0xff] }
  0x34   :  { %v80_v3 = vand.u32 7, %v4070_v2  ;;  %v4074_v4 = vadd.s32 8, %v4070_v2  ;;  %3496 = vmatprep.subr.mxu0 %v116_v13  ;;  %vm219_vm12 = vcmask 261120   ;;  %3506 = vmatpush3.msra.mxu1 %v262_v42  ;;  %v352_v45 = vld [vmem:[#allocation2 + $0x60] sm:$0xff]  ;;  %v260_v46 = vld [vmem:[#allocation2 + $0x8] sm:$0xff]  ;;  %v351_v47 = vld [vmem:[#allocation2 + $0x58] sm:$0xff]  ;;  %vm209_vm15 = vcmp.ge.s32.totalorder %v4070_v2, %v4083_v20 }
  0x35   :  { %3497 = vmatpush3.msra.mxu0 %v116_v13  ;;  %3507 = vmatprep.subr.mxu1 %v261_v44  ;;  %v259_v48 = vld [vmem:[#allocation2] sm:$0xff]  ;;  %v350_v49 = vld [vmem:[#allocation2 + $0x50] sm:$0xff]  ;;  %v438_v50 = vld [vmem:[#allocation2 + $0xb8] sm:$0xff]  ;;  %vm519_vm13 = vcmask 130048   ;;  %s4015_s18 = smov 32  }
  0x36   :  { %v82_v5 = vand.u32 3, %v80_v3  ;;  %v81_v6 = vand.u32 7, %v4074_v4  ;;  %3498 = vmatprep.subr.mxu0 %v115_v14  ;;  %v94_v21 = vadd.s32 20, %v80_v3  ;;  %3508 = vmatpush3.msra.mxu1 %v261_v44  ;;  %v3206_v58 = vld [vmem:[#allocation6 + $0x15c] ss:$0 sm:$0xff]  ;;  %vm210_vm1 = vcmp.ge.s32.totalorder %v4074_v4, %v4083_v20 }
  0x37   :  { %3499 = vmatpush3.msra.mxu0 %v115_v14  ;;  %3509 = vmatprep.subr.mxu1 %v260_v46  ;;  %v3207_v60 = vld [vmem:[#allocation6 + $0x15d] ss:$0 sm:$0xff]  ;;  %v3208_v12 = vld [vmem:[#allocation2 + $0x20] ss:$0 sm:$0xff] }
  0x38   :  { %v83_v10 = vand.u32 3, %v81_v6  ;;  %vm84_vm3 = vcmp.eq.s32.totalorder %v82_v5, 3  ;;  %3500 = vmatprep.subr.mxu0 %v114_v18  ;;  %vm106_vm5 = vcmp.eq.s32.totalorder %v4083_v20, %v94_v21  ;;  %v95_v22 = vadd.s32 20, %v81_v6  ;;  %3510 = vmatpush3.msra.mxu1 %v260_v46  ;;  %v437_v5 = vld [vmem:[#allocation2 + $0xb0] sm:$0xff]  ;;  %v436_v6 = vld [vmem:[#allocation2 + $0xa8] sm:$0xff] }
  0x39   :  { %v92_v17 = vsel %vm84_vm3, %v90_v15, %v75_v7  ;;  %3501 = vmatpush3.msra.mxu0 %v114_v18  ;;  %3511 = vmatprep.subr.mxu1 %v259_v48  ;;  %v435_v7 = vld [vmem:[#allocation2 + $0xa0] sm:$0xff]  ;;  %v805_v18 = vld [vmem:[#allocation2 + $0x90] sm:$0xff] }
  0x3a   :  { %vm85_vm4 = vcmp.eq.s32.totalorder %v83_v10, 3  ;;  %99 = vperm.xlu0 %3860, %v92_v17   ;;  %vm107_vm9 = vcmp.eq.s32.totalorder %v4083_v20, %v95_v22  ;;  %3516 = vmatprep.subr.mxu0 %v353_v43  ;;  %v3214_v17 = vld [vmem:[#allocation2 + $0xc0] ss:$0 sm:$0xff] }
  0x3b   :  { %v93_v19 = vsel %vm85_vm4, %v91_v16, %v76_v8  ;;  %3512 = vmatpush3.msra.mxu1 %v259_v48  ;;  %v3211_v8 = vld [vmem:[#allocation2 + $0x70] ss:$0 sm:$0xff]  ;;  %vm3099_vm4 = vcmask 785408  }
  0x3c   :  { %3527 = vmatprep.subr.mxu1 %v438_v50 }
  0x3e   :  { %102 = vperm.xlu0 %3860, %v93_v19  }
  0xb5   :  { %v100_v23 = vpop.permute.xlu0 %99 }
  0xb6   :  { %vm104_vm6 = vcmp.eq.s32.totalorder %v4083_v20, %v100_v23 }
  0xb7   :  { %vm108_vm8 = vmor %vm104_vm6, %vm106_vm5  ;;  %vm3191_vm5 = vcmask 1047808  }
  0xb8   :  { %v3201_v25 = vsel %vm108_vm8, 1.0, %v4014_v24 }
  0xb9   :  { %3502 = vmatprep.mubr.msk.f32.mxu0 %vm118_vm7, %v3201_v25  ;;  %v103_v26 = vpop.permute.xlu0 %102  ;;  %v804_v25 = vld [vmem:[#allocation2 + $0x88] sm:$0xff] }
  0xba   :  { %vm105_vm10 = vcmp.eq.s32.totalorder %v4083_v20, %v103_v26  ;;  %v803_v26 = vld [vmem:[#allocation2 + $0x80] sm:$0xff] }
  0xbb   :  { %vm109_vm11 = vmor %vm105_vm10, %vm107_vm9 }
  0xbc   :  { %v3202_v27 = vsel %vm109_vm11, 1.0, %v4014_v24 }
  0xbd   :  { %3503 = vmatmul.mubr.msk.f32.vlgmr.msra.gmra.mxu0 %vm118_vm7, %v3202_v27  ;;  %v802_v27 = vld [vmem:[#allocation2 + $0x78] sm:$0xff] }
  0xbe   :  { %3517 = vmatpush3.msra.mxu0 %v353_v43 }
  0xbf   :  { %3518 = vmatprep.subr.mxu0 %v352_v45 }
  0xc0   :  { %3519 = vmatpush3.msra.mxu0 %v352_v45 }
  0xc1   :  { %3520 = vmatprep.subr.mxu0 %v351_v47 }
  0xc2   :  { %3521 = vmatpush3.msra.mxu0 %v351_v47 }
  0xc3   :  { %3522 = vmatprep.subr.mxu0 %v350_v49 }
  0xc4   :  { %3523 = vmatpush3.msra.mxu0 %v350_v49 }
 0x17d   :  { %v4089_v28 = vpop.f32.mrf.mxu0 }
 0x17e   :  { %v223_v31 = vsel %vm219_vm12, %v4089_v28, 0.0 }
 0x17f   :  { %v4091_v29 = vpop.f32.mrf.mxu0 }
 0x180   :  { %v220_v30 = vsel %vm219_vm12, %v4091_v29, 0.0 }
 0x181   :  { %221 = vadd.xlane.f32.xlu1 %v220_v30  ;;  %v204_v30 = vshrl.u32 %v4070_v2, 3 }
 0x185   :  { %224 = vadd.xlane.f32.xlu1 %v223_v31  ;;  %v206_v31 = vshrl.u32 %v4083_v20, 3 }
 0x187   :  { %vm207_vm14 = vcmp.eq.s32.totalorder %v204_v30, %v206_v31 }
 0x188   :  { %vm4134_vm2 = vmand %vm207_vm14, %vm209_vm15 }
 0x20a   :  { %v222_v32 = vpop.xlane.xlu1 %221 }
 0x20b   :  { %v227_v33 = vmul.f32 0.03125, %v222_v32  ;;  %v205_v32 = vshrl.u32 %v4074_v4, 3 }
 0x20d   :  { %v229_v34 = vsub.f32 %v4091_v29, %v227_v33  ;;  %vm208_vm0 = vcmp.eq.s32.totalorder %v205_v32, %v206_v31 }
 0x20e   :  { %v225_v35 = vpop.xlane.xlu1 %224  ;;  %vm4138_vm3 = vmand %vm208_vm0, %vm210_vm1 }
 0x20f   :  { %v228_v36 = vmul.f32 0.03125, %v225_v35  ;;  %v231_v37 = vmul.f32 %v229_v34, %v229_v34  ;;  %v2082_v35 = vld [vmem:[#allocation6 + $0x44] sm:$0xff] }
 0x211   :  { %v230_v38 = vsub.f32 %v4089_v28, %v228_v36  ;;  %v233_v39 = vsel %vm219_vm12, %v231_v37, 0.0 }
 0x212   :  { %234 = vadd.xlane.f32.xlu0 %v233_v39 }
 0x213   :  { %v232_v40 = vmul.f32 %v230_v38, %v230_v38 }
 0x215   :  { %v236_v41 = vsel %vm219_vm12, %v232_v40, 0.0  ;;  %v3226_v40 = vld [vmem:[#allocation2 + $0x98] ss:$0 sm:$0xff] }
 0x216   :  { %237 = vadd.xlane.f32.xlu1 %v236_v41 }
 0x29b   :  { %v235_v51 = vpop.xlane.xlu0 %234 }
 0x29c   :  { %v239_v52 = vmul.f32 0.03125, %v235_v51 }
 0x29e   :  { %v241_v53 = vadd.f32 1e-05, %v239_v52 }
 0x29f   :  { %v238_v54 = vpop.xlane.xlu1 %237 }
 0x2a0   :  { %3861 = vrsqrt.f32 %v241_v53  ;;  %v240_v55 = vmul.f32 0.03125, %v238_v54 }
 0x2a2   :  { %v242_v56 = vadd.f32 1e-05, %v240_v55  ;;  %v720_v55 = vld [vmem:[#allocation2 + $0x40] sm:$0xff] }
 0x2a4   :  { %3863 = vrsqrt.f32 %v242_v56 }
 0x2ad   :  { %v3862_v57 = vpop.eup %3861 }
 0x2ae   :  { %v245_v59 = vmul.f32 %v3862_v57, %v229_v34 }
 0x2b0   :  { %v251_v61 = vmul.f32 %v3206_v58, %v245_v59 }
 0x2b1   :  { %v3864_v62 = vpop.eup %3863 }
 0x2b2   :  { %v246_v63 = vmul.f32 %v3864_v62, %v230_v38  ;;  %v4101_v0 = vadd.f32 %v3207_v60, %v251_v61  ;;  %v719_v62 = vld [vmem:[#allocation2 + $0x38] sm:$0xff] }
 0x2b4   :  { %v252_v1 = vmul.f32 %v3206_v58, %v246_v63  ;;  %3513 = vmatprep.mubr.msk.f32.mxu1 %vm219_vm12, %v4101_v0  ;;  %3524 = vmatprep.mubr.msk.f32.mxu0 %vm219_vm12, %v4101_v0  ;;  %v718_v63 = vld [vmem:[#allocation2 + $0x30] sm:$0xff] }
 0x2b6   :  { %v4107_v3 = vadd.f32 %v3207_v60, %v252_v1  ;;  %v717_v1 = vld [vmem:[#allocation2 + $0x28] sm:$0xff] }
 0x2b8   :  { %3514 = vmatmul.mubr.msk.f32.vlgmr.msra.gmra.mxu1 %vm219_vm12, %v4107_v3  ;;  %3525 = vmatmul.mubr.msk.f32.vlgmr.msra.gmra.mxu0 %vm219_vm12, %v4107_v3 }
 0x2b9   :  { %3528 = vmatpush3.msra.mxu1 %v438_v50  ;;  %3535 = vmatprep.mubr.msk.f32.mxu1 %vm219_vm12, %v4101_v0 }
 0x2ba   :  { %3529 = vmatprep.subr.mxu1 %v437_v5 }
 0x2bb   :  { %3530 = vmatpush3.msra.mxu1 %v437_v5  ;;  %v890_v5 = vld [vmem:[#allocation2 + $0xe0] sm:$0xff] }
 0x2bc   :  { %3531 = vmatprep.subr.mxu1 %v436_v6 }
 0x2bd   :  { %3532 = vmatpush3.msra.mxu1 %v436_v6  ;;  %v889_v6 = vld [vmem:[#allocation2 + $0xd8] sm:$0xff] }
 0x2be   :  { %3533 = vmatprep.subr.mxu1 %v435_v7 }
 0x2bf   :  { %3534 = vmatpush3.msra.mxu1 %v435_v7  ;;  %v888_v7 = vld [vmem:[#allocation2 + $0xd0] sm:$0xff] }
 0x2c0   :  { %3536 = vmatmul.mubr.msk.f32.vlgmr.msra.gmra.mxu1 %vm219_vm12, %v4107_v3 }
 0x378   :  { %v3515_v9 = vpop.f32.mrf.mxu1  ;;  %v3526_v10 = vpop.f32.mrf.mxu0 }
 0x379   :  { %v431_v11 = vadd.f32 %v3526_v10, %v3211_v8  ;;  %v346_v21 = vadd.f32 %v3515_v9, %v3208_v12 }
 0x37a   :  { %v340_v13 = vpop.f32.mrf.mxu1  ;;  %v425_v14 = vpop.f32.mrf.mxu0 }
 0x37b   :  { %v341_v15 = vadd.f32 %v3208_v12, %v340_v13  ;;  %v426_v16 = vadd.f32 %v3211_v8, %v425_v14  ;;  %3538 = vmatprep.subr.msk.mxu0 %vm519_vm13, %v431_v11  ;;  %v887_v8 = vld [vmem:[#allocation2 + $0xc8] sm:$0xff] }
 0x37c   :  { %3539 = vmatpush3.xpose.msk.msra.mxu0 %vm519_vm13, %v431_v11  ;;  %v3223_v12 = vld [vmem:[#allocation2 + $0x48] ss:$0 sm:$0xff] }
 0x37d   :  { %3540 = vmatprep.subr.msk.mxu0 %vm519_vm13, %v426_v16  ;;  %3542 = vmatprep.mubr.msk.f32.mxu0 %vm519_vm13, %v341_v15  ;;  %v3229_v15 = vld [vmem:[#allocation2 + $0xe8] ss:$0 sm:$0xff] }
 0x380   :  { %v3537_v19 = vpop.f32.mrf.mxu1  ;;  %3541 = vmatpush3.xpose.msk.msra.mxu0 %vm519_vm13, %v426_v16 }
 0x381   :  { %v516_v22 = vadd.f32 %v3537_v19, %v3214_v17  ;;  %3563 = vmatprep.subr.mxu0 %v805_v18 }
 0x382   :  { %v510_v23 = vpop.f32.mrf.mxu1 }
 0x383   :  { %v511_v24 = vadd.f32 %v3214_v17, %v510_v23  ;;  %3545 = vmatprep.subr.mxu1 %v516_v22  ;;  %3543 = vmatmul.mubr.msk.f32.vlgmr.msra.gmra.mxu0 %vm519_vm13, %v346_v21 }
 0x384   :  { %3546 = vmatpush3.msra.mxu1 %v516_v22  ;;  %3564 = vmatpush3.msra.mxu0 %v805_v18 }
 0x385   :  { %3547 = vmatprep.subr.mxu1 %v511_v24  ;;  %3571 = vmatprep.mubr.msk.f32.mxu0 %vm219_vm12, %v4101_v0 }
 0x386   :  { %3548 = vmatpush3.msra.mxu1 %v511_v24  ;;  %3565 = vmatprep.subr.mxu0 %v804_v25 }
 0x387   :  { %3566 = vmatpush3.msra.mxu0 %v804_v25  ;;  %3552 = vmatprep.subr.mxu1 %v720_v55 }
 0x388   :  { %3567 = vmatprep.subr.mxu0 %v803_v26 }
 0x389   :  { %3568 = vmatpush3.msra.mxu0 %v803_v26 }
 0x38a   :  { %3569 = vmatprep.subr.mxu0 %v802_v27 }
 0x38b   :  { %3570 = vmatpush3.msra.mxu0 %v802_v27 }
 0x38c   :  { %3572 = vmatmul.mubr.msk.f32.vlgmr.msra.gmra.mxu0 %vm219_vm12, %v4107_v3 }
 0x443   :  { %v3544_v33 = vpop.f32.mrf.mxu0 }
 0x444   :  { %v608_v36 = vmul.f32 0.25, %v3544_v33 }
 0x445   :  { %v598_v34 = vpop.f32.mrf.mxu0 }
 0x446   :  { %v607_v37 = vmul.f32 0.25, %v598_v34  ;;  %v610_v4 = vsel %vm4138_vm3, %v608_v36, -1e+30 }
 0x447   :  { %v614_v42 = vsel %vm519_vm13, %v610_v4, -inf }
 0x448   :  { %v609_v39 = vsel %vm4134_vm2, %v607_v37, -1e+30 }
 0x449   :  { %v611_v2 = vsel %vm519_vm13, %v609_v39, -inf }
 0x44a   :  { %612 = vmax.xlane.f32.xlu1 %v611_v2 }
 0x44c   :  { %v3573_v20 = vpop.f32.mrf.mxu0 }
 0x44d   :  { %v883_v41 = vadd.f32 %v3573_v20, %v3226_v40 }
 0x44e   :  { %v877_v43 = vpop.f32.mrf.mxu0  ;;  %615 = vmax.xlane.f32.xlu1 %v614_v42 }
 0x44f   :  { %v878_v44 = vadd.f32 %v3226_v40, %v877_v43  ;;  %3585 = vmatprep.subr.msk.mxu0 %vm519_vm13, %v883_v41 }
 0x450   :  { %3586 = vmatpush3.xpose.msk.msra.mxu0 %vm519_vm13, %v883_v41 }
 0x451   :  { %3587 = vmatprep.subr.msk.mxu0 %vm519_vm13, %v878_v44 }
 0x454   :  { %3588 = vmatpush3.xpose.msk.msra.mxu0 %vm519_vm13, %v878_v44 }
 0x4d3   :  { %v613_v45 = vpop.xlane.xlu1 %612 }
 0x4d4   :  { %v617_v46 = vsub.f32 %v609_v39, %v613_v45 }
 0x4d6   :  { %v619_v47 = vmul.f32 1.442695, %v617_v46  ;;  %v1165_v46 = vld [vmem:[#allocation6 + $0x2c] sm:$0xff] }
 0x4d7   :  { %v616_v48 = vpop.xlane.xlu1 %615 }
 0x4d8   :  { %3865 = vpow2.f32 %v619_v47  ;;  %v618_v49 = vsub.f32 %v610_v4, %v616_v48  ;;  %v1166_v4 = vld [vmem:[#allocation6 + $0x34] sm:$0xff]  ;;  %v715_v47 = vld [vmem:[#allocation6 + $0x24] sm:$0xff] }
 0x4da   :  { %v621_v50 = vmul.f32 1.442695, %v618_v49 }
 0x4dc   :  { %3867 = vpow2.f32 %v621_v50  ;;  %v714_v50 = vld [vmem:[#allocation6 + $0x1c] sm:$0xff] }
 0x4e5   :  { %v3866_v51 = vpop.eup %3865 }
 0x4e6   :  { %v623_v52 = vsel %vm519_vm13, %v3866_v51, 0.0 }
 0x4e7   :  { %624 = vadd.xlane.f32.xlu1 %v623_v52 }
 0x4e9   :  { %v3868_v53 = vpop.eup %3867 }
 0x4ea   :  { %v626_v54 = vsel %vm519_vm13, %v3868_v53, 0.0 }
 0x4eb   :  { %627 = vadd.xlane.f32.xlu1 %v626_v54 }
 0x570   :  { %v625_v56 = vpop.xlane.xlu1 %624 }
 0x571   :  { %3869 = vrcp.f32 %v625_v56 }
 0x574   :  { %v628_v57 = vpop.xlane.xlu1 %627 }
 0x575   :  { %3871 = vrcp.f32 %v628_v57 }
 0x57e   :  { %v3870_v58 = vpop.eup %3869 }
 0x57f   :  { %v631_v59 = vmul.f32 %v3870_v58, %v3866_v51 }
 0x581   :  { %3549 = vmatprep.mubr.msk.f32.mxu1 %vm519_vm13, %v631_v59 }
 0x582   :  { %v3872_v60 = vpop.eup %3871 }
 0x583   :  { %v632_v61 = vmul.f32 %v3872_v60, %v3868_v53 }
 0x585   :  { %3550 = vmatmul.mubr.msk.f32.vlgmr.msra.gmra.mxu1 %vm519_vm13, %v632_v61 }
 0x586   :  { %3553 = vmatpush3.msra.mxu1 %v720_v55  ;;  %3560 = vmatprep.mubr.msk.f32.mxu1 %vm219_vm12, %v4101_v0  ;;  %v3242_v55 = vld [vmem:[#allocation6 + $0x160] ss:$0 sm:$0xff] }
 0x587   :  { %3554 = vmatprep.subr.mxu1 %v719_v62 }
 0x588   :  { %3555 = vmatpush3.msra.mxu1 %v719_v62 }
 0x589   :  { %3556 = vmatprep.subr.mxu1 %v718_v63 }
 0x58a   :  { %3557 = vmatpush3.msra.mxu1 %v718_v63 }
 0x58b   :  { %3558 = vmatprep.subr.mxu1 %v717_v1 }
 0x58c   :  { %3559 = vmatpush3.msra.mxu1 %v717_v1 }
 0x58d   :  { %3561 = vmatmul.mubr.msk.f32.vlgmr.msra.gmra.mxu1 %vm219_vm12, %v4107_v3  ;;  %3574 = vmatprep.subr.mxu1 %v890_v5 }
 0x58e   :  { %3575 = vmatpush3.msra.mxu1 %v890_v5  ;;  %3582 = vmatprep.mubr.msk.f32.mxu1 %vm219_vm12, %v4101_v0 }
 0x58f   :  { %3576 = vmatprep.subr.mxu1 %v889_v6 }
 0x590   :  { %3577 = vmatpush3.msra.mxu1 %v889_v6 }
 0x591   :  { %3578 = vmatprep.subr.mxu1 %v888_v7 }
 0x592   :  { %3579 = vmatpush3.msra.mxu1 %v888_v7 }
 0x593   :  { %3580 = vmatprep.subr.mxu1 %v887_v8 }
 0x594   :  { %3581 = vmatpush3.msra.mxu1 %v887_v8 }
 0x595   :  { %3583 = vmatmul.mubr.msk.f32.vlgmr.msra.gmra.mxu1 %vm219_vm12, %v4107_v3 }
 0x645   :  { %v4164_v9 = vpop.f32.mrf.mxu1 }
 0x647   :  { %v4166_v10 = vpop.f32.mrf.mxu1 }
 0x64d   :  { %v3562_v11 = vpop.f32.mrf.mxu1 }
 0x64e   :  { %v798_v0 = vadd.f32 %v3562_v11, %v3223_v12 }
 0x64f   :  { %v792_v13 = vpop.f32.mrf.mxu1 }
 0x650   :  { %v793_v14 = vadd.f32 %v3223_v12, %v792_v13  ;;  %v1378_v12 = vld [vmem:[#allocation4 + $0x18] sm:$0xff]  ;;  %v1377_v13 = vld [vmem:[#allocation4 + $0x10] sm:$0xff] }
 0x651   :  { %3613 = vmatprep.subr.mxu0 %v1378_v12 }
 0x652   :  { %3589 = vmatprep.mubr.msk.f32.mxu0 %vm519_vm13, %v793_v14  ;;  %v1376_v14 = vld [vmem:[#allocation4 + $0x8] sm:$0xff] }
 0x653   :  { %3590 = vmatmul.mubr.msk.f32.vlgmr.msra.gmra.mxu0 %vm519_vm13, %v798_v0  ;;  %v1375_v0 = vld [vmem:[#allocation4] sm:$0xff] }
 0x654   :  { %3614 = vmatpush3.msra.mxu0 %v1378_v12 }
 0x655   :  { %v3584_v16 = vpop.f32.mrf.mxu1  ;;  %3615 = vmatprep.subr.mxu0 %v1377_v13 }
 0x656   :  { %v968_v17 = vadd.f32 %v3584_v16, %v3229_v15  ;;  %3616 = vmatpush3.msra.mxu0 %v1377_v13 }
 0x657   :  { %v962_v18 = vpop.f32.mrf.mxu1  ;;  %3617 = vmatprep.subr.mxu0 %v1376_v14 }
 0x658   :  { %v963_v19 = vadd.f32 %v3229_v15, %v962_v18  ;;  %3592 = vmatprep.subr.mxu1 %v968_v17  ;;  %3618 = vmatpush3.msra.mxu0 %v1376_v14 }
 0x659   :  { %3593 = vmatpush3.msra.mxu1 %v968_v17  ;;  %3619 = vmatprep.subr.mxu0 %v1375_v0 }
 0x65a   :  { %3594 = vmatprep.subr.mxu1 %v963_v19  ;;  %3620 = vmatpush3.msra.mxu0 %v1375_v0 }
 0x65b   :  { %3595 = vmatpush3.msra.mxu1 %v963_v19 }
 0x65c   :  { %3599 = vmatprep.subr.mxu1 %v1166_v4 }
 0x713   :  { %v3591_v3 = vpop.f32.mrf.mxu0 }
 0x714   :  { %v1059_v22 = vmul.f32 0.25, %v3591_v3 }
 0x715   :  { %v1049_v21 = vpop.f32.mrf.mxu0 }
 0x716   :  { %v1058_v23 = vmul.f32 0.25, %v1049_v21  ;;  %v1061_v26 = vsel %vm4138_vm3, %v1059_v22, -1e+30  ;;  %v3243_v22 = vld [vmem:[#allocation6 + $0x15e] ss:$0 sm:$0xff] }
 0x717   :  { %v1065_v27 = vsel %vm519_vm13, %v1061_v26, -inf }
 0x718   :  { %v1060_v24 = vsel %vm4134_vm2, %v1058_v23, -1e+30 }
 0x719   :  { %v1062_v25 = vsel %vm519_vm13, %v1060_v24, -inf }
 0x71a   :  { %1063 = vmax.xlane.f32.xlu1 %v1062_v25 }
 0x71e   :  { %1066 = vmax.xlane.f32.xlu1 %v1065_v27  ;;  %v3244_v27 = vld [vmem:[#allocation6 + $0x15f] ss:$0 sm:$0xff] }
 0x7a3   :  { %v1064_v30 = vpop.xlane.xlu1 %1063 }
 0x7a4   :  { %v1068_v31 = vsub.f32 %v1060_v24, %v1064_v30 }
 0x7a6   :  { %v1070_v32 = vmul.f32 1.442695, %v1068_v31 }
 0x7a7   :  { %v1067_v33 = vpop.xlane.xlu1 %1066 }
 0x7a8   :  { %3873 = vpow2.f32 %v1070_v32  ;;  %v1069_v34 = vsub.f32 %v1061_v26, %v1067_v33  ;;  %v1498_v33 = vld [vmem:[#allocation6 + $0xd4] sm:$0xff] }
 0x7aa   :  { %v1072_v36 = vmul.f32 1.442695, %v1069_v34  ;;  %v1497_v34 = vld [vmem:[#allocation6 + $0xcc] sm:$0xff] }
 0x7ac   :  { %3875 = vpow2.f32 %v1072_v36  ;;  %v1496_v36 = vld [vmem:[#allocation6 + $0xc4] sm:$0xff] }
 0x7b5   :  { %v3874_v37 = vpop.eup %3873 }
 0x7b6   :  { %v1074_v39 = vsel %vm519_vm13, %v3874_v37, 0.0 }
 0x7b7   :  { %1075 = vadd.xlane.f32.xlu1 %v1074_v39  ;;  %v1494_v39 = vld [vmem:[#allocation6 + $0xb4] sm:$0xff] }
 0x7b9   :  { %v3876_v2 = vpop.eup %3875 }
 0x7ba   :  { %v1077_v40 = vsel %vm519_vm13, %v3876_v2, 0.0 }
 0x7bb   :  { %1078 = vadd.xlane.f32.xlu0 %v1077_v40  ;;  %v1492_v40 = vld [vmem:[#allocation6 + $0xa4] sm:$0xff] }
 0x840   :  { %v1076_v20 = vpop.xlane.xlu1 %1075 }
 0x841   :  { %3877 = vrcp.f32 %v1076_v20  ;;  %v1490_v20 = vld [vmem:[#allocation6 + $0x94] sm:$0xff] }
 0x844   :  { %v1079_v41 = vpop.xlane.xlu0 %1078 }
 0x845   :  { %3879 = vrcp.f32 %v1079_v41  ;;  %v1489_v41 = vld [vmem:[#allocation6 + $0x8c] sm:$0xff] }
 0x84e   :  { %v3878_v42 = vpop.eup %3877 }
 0x84f   :  { %v1082_v43 = vmul.f32 %v3878_v42, %v3874_v37  ;;  %v1495_v37 = vld [vmem:[#allocation6 + $0xbc] sm:$0xff]  ;;  %v1488_v42 = vld [vmem:[#allocation6 + $0x84] sm:$0xff] }
 0x851   :  { %3596 = vmatprep.mubr.msk.f32.mxu1 %vm519_vm13, %v1082_v43  ;;  %v1487_v43 = vld [vmem:[#allocation6 + $0x7c] sm:$0xff] }
 0x852   :  { %v3880_v44 = vpop.eup %3879 }
 0x853   :  { %v1083_v45 = vmul.f32 %v3880_v44, %v3876_v2  ;;  %v1493_v2 = vld [vmem:[#allocation6 + $0xac] sm:$0xff]  ;;  %v1486_v44 = vld [vmem:[#allocation6 + $0x74] sm:$0xff] }
 0x855   :  { %3597 = vmatmul.mubr.msk.f32.vlgmr.msra.gmra.mxu1 %vm519_vm13, %v1083_v45  ;;  %v1485_v45 = vld [vmem:[#allocation6 + $0x6c] sm:$0xff] }
 0x856   :  { %3600 = vmatpush3.msra.mxu1 %v1166_v4  ;;  %v1491_v4 = vld [vmem:[#allocation6 + $0x9c] sm:$0xff] }
 0x857   :  { %3601 = vmatprep.subr.mxu1 %v1165_v46 }
 0x858   :  { %3602 = vmatpush3.msra.mxu1 %v1165_v46  ;;  %v1484_v46 = vld [vmem:[#allocation6 + $0x64] sm:$0xff] }
 0x859   :  { %3606 = vmatprep.subr.mxu1 %v715_v47 }
 0x915   :  { %v3598_v48 = vpop.f32.mrf.mxu1 }
 0x917   :  { %v1156_v49 = vpop.f32.mrf.mxu1 }
 0x918   :  { %3603 = vmatprep.mubr.msk.f32.mxu1 %vm519_vm13, %v1156_v49 }
 0x919   :  { %3604 = vmatmul.mubr.msk.f32.vlgmr.msra.gmra.mxu1 %vm519_vm13, %v3598_v48  ;;  %v3245_v48 = vld [vmem:[#allocation4 + $0x20] ss:$0 sm:$0xff] }
 0x91a   :  { %3607 = vmatpush3.msra.mxu1 %v715_v47  ;;  %3610 = vmatprep.mubr.msk.f32.mxu1 %vm519_vm13, %v4166_v10  ;;  %v1483_v47 = vld [vmem:[#allocation6 + $0x5c] sm:$0xff] }
 0x91b   :  { %3608 = vmatprep.subr.mxu1 %v714_v50 }
 0x91c   :  { %3609 = vmatpush3.msra.mxu1 %v714_v50 }
 0x91d   :  { %3611 = vmatmul.mubr.msk.f32.vlgmr.msra.gmra.mxu1 %vm519_vm13, %v4164_v9  ;;  %3624 = vmatprep.subr.mxu1 %v1498_v33 }
 0x91e   :  { %3625 = vmatpush3.msra.mxu1 %v1498_v33  ;;  %v1721_v33 = vld [vmem:[#allocation2 + $0x158] sm:$0xff] }
 0x91f   :  { %3626 = vmatprep.subr.mxu1 %v1497_v34 }
 0x920   :  { %3627 = vmatpush3.msra.mxu1 %v1497_v34 }
 0x921   :  { %3628 = vmatprep.subr.mxu1 %v1496_v36 }
 0x922   :  { %3629 = vmatpush3.msra.mxu1 %v1496_v36 }
 0x923   :  { %3630 = vmatprep.subr.mxu1 %v1495_v37 }
 0x924   :  { %3631 = vmatpush3.msra.mxu1 %v1495_v37 }
 0x925   :  { %3632 = vmatprep.subr.mxu1 %v1494_v39 }
 0x926   :  { %3633 = vmatpush3.msra.mxu1 %v1494_v39 }
 0x927   :  { %3634 = vmatprep.subr.mxu1 %v1493_v2 }
 0x928   :  { %3635 = vmatpush3.msra.mxu1 %v1493_v2 }
 0x929   :  { %3636 = vmatprep.subr.mxu1 %v1492_v40 }
 0x92a   :  { %3637 = vmatpush3.msra.mxu1 %v1492_v40 }
 0x92b   :  { %3638 = vmatprep.subr.mxu1 %v1491_v4 }
 0x92c   :  { %3639 = vmatpush3.msra.mxu1 %v1491_v4 }
 0x92d   :  { %3640 = vmatprep.subr.mxu1 %v1490_v20 }
 0x92e   :  { %3641 = vmatpush3.msra.mxu1 %v1490_v20  ;;  %v3249_v20 = vld [vmem:[#allocation6 + $0x162] ss:$0 sm:$0xff] }
 0x92f   :  { %3642 = vmatprep.subr.mxu1 %v1489_v41 }
 0x930   :  { %3643 = vmatpush3.msra.mxu1 %v1489_v41 }
 0x931   :  { %3644 = vmatprep.subr.mxu1 %v1488_v42 }
 0x932   :  { %3645 = vmatpush3.msra.mxu1 %v1488_v42 }
 0x933   :  { %3646 = vmatprep.subr.mxu1 %v1487_v43 }
 0x934   :  { %3647 = vmatpush3.msra.mxu1 %v1487_v43 }
 0x935   :  { %3648 = vmatprep.subr.mxu1 %v1486_v44 }
 0x936   :  { %3649 = vmatpush3.msra.mxu1 %v1486_v44 }
 0x937   :  { %3650 = vmatprep.subr.mxu1 %v1485_v45 }
 0x938   :  { %3651 = vmatpush3.msra.mxu1 %v1485_v45 }
 0x939   :  { %3652 = vmatprep.subr.mxu1 %v1484_v46 }
 0x93a   :  { %3653 = vmatpush3.msra.mxu1 %v1484_v46  ;;  %v3250_v46 = vld [vmem:[#allocation6 + $0x163] ss:$0 sm:$0xff] }
 0x93b   :  { %3654 = vmatprep.subr.mxu1 %v1483_v47 }
 0x93c   :  { %3655 = vmatpush3.msra.mxu1 %v1483_v47 }
 0x9d9   :  { %v3605_v51 = vpop.f32.mrf.mxu1 }
 0x9db   :  { %v1239_v52 = vpop.f32.mrf.mxu1 }
 0x9dd   :  { %v3612_v53 = vpop.f32.mrf.mxu1 }
 0x9de   :  { %v1326_v54 = vadd.f32 %v3612_v53, %v3605_v51 }
 0x9df   :  { %v1320_v56 = vpop.f32.mrf.mxu1 }
 0x9e0   :  { %v1330_v57 = vadd.f32 %v4089_v28, %v1326_v54  ;;  %v1321_v58 = vadd.f32 %v1320_v56, %v1239_v52 }
 0x9e2   :  { %v4187_v59 = vadd.f32 %v3242_v55, %v1330_v57  ;;  %v1329_v60 = vadd.f32 %v1321_v58, %v4091_v29 }
 0x9e4   :  { %v4190_v61 = vadd.f32 %v3242_v55, %v1329_v60  ;;  %v1340_v62 = vsel %vm219_vm12, %v4187_v59, 0.0 }
 0x9e5   :  { %1341 = vadd.xlane.f32.xlu0 %v1340_v62 }
 0x9e6   :  { %v1337_v63 = vsel %vm219_vm12, %v4190_v61, 0.0 }
 0x9e7   :  { %1338 = vadd.xlane.f32.xlu1 %v1337_v63 }
 0xa6e   :  { %v1342_v1 = vpop.xlane.xlu0 %1341 }
 0xa6f   :  { %v1344_v5 = vmul.f32 0.03125, %v1342_v1 }
 0xa70   :  { %v1339_v6 = vpop.xlane.xlu1 %1338 }
 0xa71   :  { %v1346_v28 = vsub.f32 %v4187_v59, %v1344_v5  ;;  %v1343_v7 = vmul.f32 0.03125, %v1339_v6 }
 0xa73   :  { %v1345_v8 = vsub.f32 %v4190_v61, %v1343_v7  ;;  %v1348_v9 = vmul.f32 %v1346_v28, %v1346_v28 }
 0xa75   :  { %v1352_v29 = vsel %vm219_vm12, %v1348_v9, 0.0  ;;  %v1347_v10 = vmul.f32 %v1345_v8, %v1345_v8 }
 0xa76   :  { %1353 = vadd.xlane.f32.xlu0 %v1352_v29 }
 0xa77   :  { %v1349_v11 = vsel %vm219_vm12, %v1347_v10, 0.0 }
 0xa78   :  { %1350 = vadd.xlane.f32.xlu1 %v1349_v11  ;;  %v3248_v11 = vld [vmem:[#allocation6 + $0x161] ss:$0 sm:$0xff] }
 0xaff   :  { %v1354_v15 = vpop.xlane.xlu0 %1353 }
 0xb00   :  { %v1356_v16 = vmul.f32 0.03125, %v1354_v15 }
 0xb01   :  { %v1351_v17 = vpop.xlane.xlu1 %1350 }
 0xb02   :  { %v1358_v18 = vadd.f32 1e-05, %v1356_v16  ;;  %v1355_v19 = vmul.f32 0.03125, %v1351_v17 }
 0xb04   :  { %3881 = vrsqrt.f32 %v1358_v18  ;;  %v1357_v3 = vadd.f32 1e-05, %v1355_v19 }
 0xb06   :  { %3883 = vrsqrt.f32 %v1357_v3 }
 0xb11   :  { %v3882_v21 = vpop.eup %3881 }
 0xb12   :  { %v1362_v23 = vmul.f32 %v3882_v21, %v1346_v28 }
 0xb13   :  { %v3884_v24 = vpop.eup %3883 }
 0xb14   :  { %v1361_v25 = vmul.f32 %v3884_v24, %v1345_v8  ;;  %v1368_v26 = vmul.f32 %v3243_v22, %v1362_v23 }
 0xb16   :  { %v1367_v30 = vmul.f32 %v3243_v22, %v1361_v25  ;;  %v1374_v32 = vadd.f32 %v3244_v27, %v1368_v26 }
 0xb18   :  { %v1373_v31 = vadd.f32 %v3244_v27, %v1367_v30  ;;  %v1630_v27 = vld [vmem:[#allocation2 + $0x108] sm:$0xff]  ;;  %v1629_v30 = vld [vmem:[#allocation2 + $0x100] sm:$0xff] }
 0xb19   :  { %3659 = vmatprep.subr.mxu0 %v1630_v27 }
 0xb1a   :  { %3621 = vmatprep.mubr.msk.f32.mxu0 %vm219_vm12, %v1373_v31  ;;  %v1628_v31 = vld [vmem:[#allocation2 + $0xf8] sm:$0xff] }
 0xb1b   :  { %3622 = vmatmul.mubr.msk.f32.vlgmr.msra.gmra.mxu0 %vm219_vm12, %v1374_v32  ;;  %v1627_v32 = vld [vmem:[#allocation2 + $0xf0] sm:$0xff] }
 0xb1c   :  { %3660 = vmatpush3.msra.mxu0 %v1630_v27 }
 0xb1d   :  { %3661 = vmatprep.subr.mxu0 %v1629_v30 }
 0xb1e   :  { %3662 = vmatpush3.msra.mxu0 %v1629_v30 }
 0xb1f   :  { %3663 = vmatprep.subr.mxu0 %v1628_v31 }
 0xb20   :  { %3664 = vmatpush3.msra.mxu0 %v1628_v31 }
 0xb21   :  { %3665 = vmatprep.subr.mxu0 %v1627_v32 }
 0xb22   :  { %3666 = vmatpush3.msra.mxu0 %v1627_v32 }
 0xb23   :  { %3670 = vmatprep.subr.mxu0 %v1721_v33 }
 0xbdb   :  { %v3623_v49 = vpop.f32.mrf.mxu0 }
 0xbdc   :  { %v1462_v50 = vadd.f32 %v3623_v49, %v3245_v48  ;;  %v1720_v49 = vld [vmem:[#allocation2 + $0x150] sm:$0xff] }
 0xbdd   :  { %v1456_v51 = vpop.f32.mrf.mxu0 }
 0xbde   :  { %v1466_v52 = vmul.f32 %v1462_v50, %v1462_v50  ;;  %v1457_v53 = vadd.f32 %v3245_v48, %v1456_v51  ;;  %v1718_v51 = vld [vmem:[#allocation2 + $0x140] sm:$0xff] }
 0xbe0   :  { %v1468_v54 = vmul.f32 %v1466_v52, %v1462_v50  ;;  %v1465_v55 = vmul.f32 %v1457_v53, %v1457_v53  ;;  %v1806_v52 = vld [vmem:[#allocation2 + $0x1a8] sm:$0xff] }
 0xbe2   :  { %v1470_v56 = vmul.f32 0.044715, %v1468_v54  ;;  %v1467_v57 = vmul.f32 %v1465_v55, %v1457_v53  ;;  %v1804_v54 = vld [vmem:[#allocation2 + $0x198] sm:$0xff]  ;;  %v1803_v55 = vld [vmem:[#allocation2 + $0x190] sm:$0xff] }
 0xbe4   :  { %v1472_v58 = vadd.f32 %v1470_v56, %v1462_v50  ;;  %v1469_v60 = vmul.f32 0.044715, %v1467_v57  ;;  %v3251_v57 = vld [vmem:[#allocation2 + $0x110] ss:$0 sm:$0xff] }
 0xbe6   :  { %v1474_v62 = vmul.f32 0.7978846, %v1472_v58  ;;  %v1471_v63 = vadd.f32 %v1469_v60, %v1457_v53 }
 0xbe8   :  { %3885 = vtanh.f32 %v1474_v62  ;;  %v1473_v1 = vmul.f32 0.7978846, %v1471_v63  ;;  %v3254_v62 = vld [vmem:[#allocation2 + $0x160] ss:$0 sm:$0xff] }
 0xbea   :  { %3887 = vtanh.f32 %v1473_v1 }
 0xbf5   :  { %v3886_v5 = vpop.eup %3885 }
 0xbf6   :  { %v1478_v6 = vadd.f32 1.0, %v3886_v5 }
 0xbf7   :  { %v3888_v28 = vpop.eup %3887 }
 0xbf8   :  { %v1477_v7 = vadd.f32 1.0, %v3888_v28  ;;  %v1480_v8 = vmul.f32 0.5, %v1478_v6  ;;  %v3257_v28 = vld [vmem:[#allocation2 + $0x1b0] ss:$0 sm:$0xff] }
 0xbfa   :  { %v1479_v9 = vmul.f32 0.5, %v1477_v7  ;;  %v1482_v10 = vmul.f32 %v1480_v8, %v1462_v50  ;;  %v1719_v50 = vld [vmem:[#allocation2 + $0x148] sm:$0xff]  ;;  %v2172_v7 = vld [vmem:[#allocation2 + $0x180] sm:$0xff] }
 0xbfc   :  { %v1481_v29 = vmul.f32 %v1479_v9, %v1457_v53  ;;  %v1805_v53 = vld [vmem:[#allocation2 + $0x1a0] sm:$0xff] }
 0xbfe   :  { %3656 = vmatprep.mubr.f32.mxu1 %v1481_v29 }
 0xbff   :  { %3657 = vmatmul.mubr.f32.vlgmr.msra.gmra.mxu1 %v1482_v10 }
 0xcbf   :  { %v3658_v12 = vpop.f32.mrf.mxu1 }
 0xcc0   :  { %v1575_v13 = vadd.f32 %v3658_v12, %v4187_v59  ;;  %v2171_v12 = vld [vmem:[#allocation2 + $0x178] sm:$0xff] }
 0xcc1   :  { %v1565_v14 = vpop.f32.mrf.mxu1 }
 0xcc2   :  { %v4203_v0 = vadd.f32 %v3248_v11, %v1575_v13  ;;  %v1574_v15 = vadd.f32 %v1565_v14, %v4190_v61  ;;  %v2170_v13 = vld [vmem:[#allocation2 + $0x170] sm:$0xff]  ;;  %v2169_v14 = vld [vmem:[#allocation2 + $0x168] sm:$0xff] }
 0xcc4   :  { %v4206_v16 = vadd.f32 %v3248_v11, %v1574_v15  ;;  %v1591_v17 = vsel %vm219_vm12, %v4203_v0, 0.0 }
 0xcc5   :  { %1592 = vadd.xlane.f32.xlu0 %v1591_v17 }
 0xcc6   :  { %v1588_v18 = vsel %vm219_vm12, %v4206_v16, 0.0 }
 0xcc7   :  { %1589 = vadd.xlane.f32.xlu1 %v1588_v18 }
 0xd4e   :  { %v1593_v19 = vpop.xlane.xlu0 %1592 }
 0xd4f   :  { %v1595_v3 = vmul.f32 0.03125, %v1593_v19 }
 0xd50   :  { %v1590_v21 = vpop.xlane.xlu1 %1589 }
 0xd51   :  { %v1597_v59 = vsub.f32 %v4203_v0, %v1595_v3  ;;  %v1594_v22 = vmul.f32 0.03125, %v1590_v21 }
 0xd53   :  { %v1596_v23 = vsub.f32 %v4206_v16, %v1594_v22  ;;  %v1599_v24 = vmul.f32 %v1597_v59, %v1597_v59 }
 0xd55   :  { %v1603_v61 = vsel %vm219_vm12, %v1599_v24, 0.0  ;;  %v1598_v25 = vmul.f32 %v1596_v23, %v1596_v23 }
 0xd56   :  { %1604 = vadd.xlane.f32.xlu0 %v1603_v61 }
 0xd57   :  { %v1600_v26 = vsel %vm219_vm12, %v1598_v25, 0.0 }
 0xd58   :  { %1601 = vadd.xlane.f32.xlu1 %v1600_v26 }
 0xddf   :  { %v1605_v34 = vpop.xlane.xlu0 %1604 }
 0xde0   :  { %v1607_v36 = vmul.f32 0.03125, %v1605_v34 }
 0xde1   :  { %v1602_v37 = vpop.xlane.xlu1 %1601 }
 0xde2   :  { %v1609_v39 = vadd.f32 1e-05, %v1607_v36  ;;  %v1606_v2 = vmul.f32 0.03125, %v1602_v37 }
 0xde4   :  { %3889 = vrsqrt.f32 %v1609_v39  ;;  %v1608_v40 = vadd.f32 1e-05, %v1606_v2 }
 0xde6   :  { %3891 = vrsqrt.f32 %v1608_v40  ;;  %v2087_v40 = vld [vmem:[#allocation2 + $0x130] sm:$0xff] }
 0xdf1   :  { %v3890_v4 = vpop.eup %3889 }
 0xdf2   :  { %v1613_v41 = vmul.f32 %v3890_v4, %v1597_v59 }
 0xdf3   :  { %v3892_v42 = vpop.eup %3891 }
 0xdf4   :  { %v1612_v43 = vmul.f32 %v3892_v42, %v1596_v23  ;;  %v1619_v44 = vmul.f32 %v3249_v20, %v1613_v41  ;;  %v3269_v23 = vld [vmem:[#allocation2 + $0x188] ss:$0 sm:$0xff] }
 0xdf6   :  { %v1618_v45 = vmul.f32 %v3249_v20, %v1612_v43  ;;  %v4218_v48 = vadd.f32 %v3250_v46, %v1619_v44 }
 0xdf8   :  { %v4216_v47 = vadd.f32 %v3250_v46, %v1618_v45  ;;  %v2086_v45 = vld [vmem:[#allocation2 + $0x128] sm:$0xff]  ;;  %v2085_v46 = vld [vmem:[#allocation2 + $0x120] sm:$0xff] }
 0xdfa   :  { %3667 = vmatprep.mubr.msk.f32.mxu0 %vm219_vm12, %v4216_v47 }
 0xdfb   :  { %3668 = vmatmul.mubr.msk.f32.vlgmr.msra.gmra.mxu0 %vm219_vm12, %v4218_v48 }
 0xdfc   :  { %3671 = vmatpush3.msra.mxu0 %v1721_v33  ;;  %3678 = vmatprep.mubr.msk.f32.mxu0 %vm219_vm12, %v4216_v47 }
 0xdfd   :  { %3672 = vmatprep.subr.mxu0 %v1720_v49 }
 0xdfe   :  { %3673 = vmatpush3.msra.mxu0 %v1720_v49  ;;  %v2084_v49 = vld [vmem:[#allocation2 + $0x118] sm:$0xff] }
 0xdff   :  { %3674 = vmatprep.subr.mxu0 %v1719_v50 }
 0xe00   :  { %3675 = vmatpush3.msra.mxu0 %v1719_v50  ;;  %v2257_v50 = vld [vmem:[#allocation2 + $0x1d0] sm:$0xff] }
 0xe01   :  { %3676 = vmatprep.subr.mxu0 %v1718_v51 }
 0xe02   :  { %3677 = vmatpush3.msra.mxu0 %v1718_v51  ;;  %v2256_v51 = vld [vmem:[#allocation2 + $0x1c8] sm:$0xff] }
 0xe03   :  { %3679 = vmatmul.mubr.msk.f32.vlgmr.msra.gmra.mxu0 %vm219_vm12, %v4218_v48  ;;  %3681 = vmatprep.subr.mxu0 %v1806_v52 }
 0xe04   :  { %3682 = vmatpush3.msra.mxu0 %v1806_v52  ;;  %3689 = vmatprep.mubr.msk.f32.mxu0 %vm219_vm12, %v4216_v47  ;;  %v2255_v52 = vld [vmem:[#allocation2 + $0x1c0] sm:$0xff] }
 0xe05   :  { %3683 = vmatprep.subr.mxu0 %v1805_v53 }
 0xe06   :  { %3684 = vmatpush3.msra.mxu0 %v1805_v53  ;;  %v2254_v53 = vld [vmem:[#allocation2 + $0x1b8] sm:$0xff] }
 0xe07   :  { %3685 = vmatprep.subr.mxu0 %v1804_v54 }
 0xe08   :  { %3686 = vmatpush3.msra.mxu0 %v1804_v54 }
 0xe09   :  { %3687 = vmatprep.subr.mxu0 %v1803_v55 }
 0xe0a   :  { %3688 = vmatpush3.msra.mxu0 %v1803_v55 }
 0xe0b   :  { %3690 = vmatmul.mubr.msk.f32.vlgmr.msra.gmra.mxu0 %vm219_vm12, %v4218_v48 }
 0xebb   :  { %v3669_v56 = vpop.f32.mrf.mxu0 }
 0xebc   :  { %v1714_v9 = vadd.f32 %v3669_v56, %v3251_v57 }
 0xebd   :  { %v1708_v58 = vpop.f32.mrf.mxu0 }
 0xebe   :  { %v1709_v60 = vadd.f32 %v3251_v57, %v1708_v58  ;;  %v3266_v57 = vld [vmem:[#allocation2 + $0x138] ss:$0 sm:$0xff] }
 0xec0   :  { %3696 = vmatprep.mubr.msk.f32.mxu0 %vm519_vm13, %v1709_v60 }
 0xec3   :  { %v3680_v63 = vpop.f32.mrf.mxu0 }
 0xec4   :  { %v1799_v1 = vadd.f32 %v3680_v63, %v3254_v62 }
 0xec5   :  { %v1793_v5 = vpop.f32.mrf.mxu0 }
 0xec6   :  { %v1794_v6 = vadd.f32 %v3254_v62, %v1793_v5  ;;  %3692 = vmatprep.subr.msk.mxu0 %vm519_vm13, %v1799_v1 }
 0xec7   :  { %3693 = vmatpush3.xpose.msk.msra.mxu0 %vm519_vm13, %v1799_v1 }
 0xec8   :  { %3694 = vmatprep.subr.msk.mxu0 %vm519_vm13, %v1794_v6 }
 0xecb   :  { %v3691_v8 = vpop.f32.mrf.mxu0  ;;  %3695 = vmatpush3.xpose.msk.msra.mxu0 %vm519_vm13, %v1794_v6 }
 0xecc   :  { %v1884_v29 = vadd.f32 %v3691_v8, %v3257_v28  ;;  %3717 = vmatprep.subr.mxu0 %v2172_v7 }
 0xecd   :  { %v1878_v10 = vpop.f32.mrf.mxu0 }
 0xece   :  { %v1879_v11 = vadd.f32 %v3257_v28, %v1878_v10  ;;  %3697 = vmatmul.mubr.msk.f32.vlgmr.msra.gmra.mxu0 %vm519_vm13, %v1714_v9  ;;  %3699 = vmatprep.subr.mxu1 %v1884_v29 }
 0xecf   :  { %3700 = vmatpush3.msra.mxu1 %v1884_v29  ;;  %3718 = vmatpush3.msra.mxu0 %v2172_v7 }
 0xed0   :  { %3725 = vmatprep.mubr.msk.f32.mxu0 %vm219_vm12, %v4216_v47  ;;  %3701 = vmatprep.subr.mxu1 %v1879_v11 }
 0xed1   :  { %3719 = vmatprep.subr.mxu0 %v2171_v12  ;;  %3702 = vmatpush3.msra.mxu1 %v1879_v11 }
 0xed2   :  { %3720 = vmatpush3.msra.mxu0 %v2171_v12  ;;  %3706 = vmatprep.subr.mxu1 %v2087_v40 }
 0xed3   :  { %3721 = vmatprep.subr.mxu0 %v2170_v13 }
 0xed4   :  { %3722 = vmatpush3.msra.mxu0 %v2170_v13 }
 0xed5   :  { %3723 = vmatprep.subr.mxu0 %v2169_v14 }
 0xed6   :  { %3724 = vmatpush3.msra.mxu0 %v2169_v14 }
 0xed7   :  { %3726 = vmatmul.mubr.msk.f32.vlgmr.msra.gmra.mxu0 %vm219_vm12, %v4218_v48 }
 0xf8e   :  { %v3698_v15 = vpop.f32.mrf.mxu0 }
 0xf8f   :  { %v1975_v17 = vmul.f32 0.25, %v3698_v15 }
 0xf90   :  { %v1965_v18 = vpop.f32.mrf.mxu0 }
 0xf91   :  { %v1974_v19 = vmul.f32 0.25, %v1965_v18  ;;  %v1977_v3 = vsel %vm4138_vm3, %v1975_v17, -1e+30 }
 0xf92   :  { %v1981_v21 = vsel %vm519_vm13, %v1977_v3, -inf }
 0xf93   :  { %1982 = vmax.xlane.f32.xlu0 %v1981_v21  ;;  %v1976_v59 = vsel %vm4134_vm2, %v1974_v19, -1e+30 }
 0xf94   :  { %v1978_v22 = vsel %vm519_vm13, %v1976_v59, -inf }
 0xf95   :  { %1979 = vmax.xlane.f32.xlu1 %v1978_v22 }
 0xf97   :  { %v3727_v24 = vpop.f32.mrf.mxu0 }
 0xf98   :  { %v2250_v61 = vadd.f32 %v3727_v24, %v3269_v23 }
 0xf99   :  { %v2244_v25 = vpop.f32.mrf.mxu0 }
 0xf9a   :  { %v2245_v26 = vadd.f32 %v3269_v23, %v2244_v25  ;;  %3739 = vmatprep.subr.msk.mxu0 %vm519_vm13, %v2250_v61 }
 0xf9b   :  { %3740 = vmatpush3.xpose.msk.msra.mxu0 %vm519_vm13, %v2250_v61 }
 0xf9c   :  { %3741 = vmatprep.subr.msk.mxu0 %vm519_vm13, %v2245_v26 }
 0xf9f   :  { %3742 = vmatpush3.xpose.msk.msra.mxu0 %vm519_vm13, %v2245_v26 }
0x101c   :  { %v1983_v27 = vpop.xlane.xlu0 %1982 }
0x101d   :  { %v1985_v30 = vsub.f32 %v1977_v3, %v1983_v27  ;;  %v2081_v27 = vld [vmem:[#allocation6 + $0x3c] sm:$0xff] }
0x101e   :  { %v1980_v31 = vpop.xlane.xlu1 %1979 }
0x101f   :  { %v1988_v32 = vmul.f32 1.442695, %v1985_v30  ;;  %v1984_v33 = vsub.f32 %v1976_v59, %v1980_v31  ;;  %v2533_v59 = vld [vmem:[#allocation6 + $0x54] sm:$0xff]  ;;  %v2532_v30 = vld [vmem:[#allocation6 + $0x4c] sm:$0xff] }
0x1020   :  { %3753 = vmatprep.subr.mxu0 %v2533_v59 }
0x1021   :  { %3893 = vpow2.f32 %v1988_v32  ;;  %v1986_v34 = vmul.f32 1.442695, %v1984_v33 }
0x1023   :  { %3895 = vpow2.f32 %v1986_v34 }
0x102e   :  { %v3894_v36 = vpop.eup %3893 }
0x102f   :  { %v1993_v37 = vsel %vm519_vm13, %v3894_v36, 0.0 }
0x1030   :  { %v3896_v39 = vpop.eup %3895  ;;  %1994 = vadd.xlane.f32.xlu0 %v1993_v37 }
0x1031   :  { %v1990_v2 = vsel %vm519_vm13, %v3896_v39, 0.0 }
0x1032   :  { %1991 = vadd.xlane.f32.xlu1 %v1990_v2 }
0x10b9   :  { %v1995_v4 = vpop.xlane.xlu0 %1994 }
0x10ba   :  { %3897 = vrcp.f32 %v1995_v4 }
0x10bb   :  { %v1992_v20 = vpop.xlane.xlu1 %1991 }
0x10bc   :  { %3899 = vrcp.f32 %v1992_v20 }
0x10c7   :  { %v3898_v41 = vpop.eup %3897 }
0x10c8   :  { %v1999_v44 = vmul.f32 %v3898_v41, %v3894_v36 }
0x10c9   :  { %v3900_v42 = vpop.eup %3899 }
0x10ca   :  { %v1998_v43 = vmul.f32 %v3900_v42, %v3896_v39  ;;  %v3285_v39 = vld [vmem:[#allocation6 + $0x166] ss:$0 sm:$0xff] }
0x10cc   :  { %3703 = vmatprep.mubr.msk.f32.mxu1 %vm519_vm13, %v1998_v43 }
0x10cd   :  { %3704 = vmatmul.mubr.msk.f32.vlgmr.msra.gmra.mxu1 %vm519_vm13, %v1999_v44 }
0x10ce   :  { %3707 = vmatpush3.msra.mxu1 %v2087_v40  ;;  %3714 = vmatprep.mubr.msk.f32.mxu1 %vm219_vm12, %v4216_v47 }
0x10cf   :  { %3708 = vmatprep.subr.mxu1 %v2086_v45 }
0x10d0   :  { %3709 = vmatpush3.msra.mxu1 %v2086_v45 }
0x10d1   :  { %3710 = vmatprep.subr.mxu1 %v2085_v46 }
0x10d2   :  { %3711 = vmatpush3.msra.mxu1 %v2085_v46 }
0x10d3   :  { %3712 = vmatprep.subr.mxu1 %v2084_v49 }
0x10d4   :  { %3713 = vmatpush3.msra.mxu1 %v2084_v49 }
0x10d5   :  { %3715 = vmatmul.mubr.msk.f32.vlgmr.msra.gmra.mxu1 %vm219_vm12, %v4218_v48  ;;  %3728 = vmatprep.subr.mxu1 %v2257_v50 }
0x10d6   :  { %3729 = vmatpush3.msra.mxu1 %v2257_v50  ;;  %3736 = vmatprep.mubr.msk.f32.mxu1 %vm219_vm12, %v4216_v47  ;;  %v3272_v47 = vld [vmem:[#allocation2 + $0x1d8] ss:$0 sm:$0xff] }
0x10d7   :  { %3730 = vmatprep.subr.mxu1 %v2256_v51 }
0x10d8   :  { %3731 = vmatpush3.msra.mxu1 %v2256_v51 }
0x10d9   :  { %3732 = vmatprep.subr.mxu1 %v2255_v52 }
0x10da   :  { %3733 = vmatpush3.msra.mxu1 %v2255_v52 }
0x10db   :  { %3734 = vmatprep.subr.mxu1 %v2254_v53 }
0x10dc   :  { %3735 = vmatpush3.msra.mxu1 %v2254_v53 }
0x10dd   :  { %3737 = vmatmul.mubr.msk.f32.vlgmr.msra.gmra.mxu1 %vm219_vm12, %v4218_v48 }
0x118d   :  { %v3705_v54 = vpop.f32.mrf.mxu1 }
0x118f   :  { %v2072_v55 = vpop.f32.mrf.mxu1 }
0x1195   :  { %v3716_v56 = vpop.f32.mrf.mxu1 }
0x1196   :  { %v2165_v62 = vadd.f32 %v3716_v56, %v3266_v57  ;;  %v2745_v56 = vld [vmem:[#allocation4 + $0x38] sm:$0xff] }
0x1197   :  { %v2159_v58 = vpop.f32.mrf.mxu1 }
0x1198   :  { %v2160_v60 = vadd.f32 %v3266_v57, %v2159_v58  ;;  %v2744_v57 = vld [vmem:[#allocation4 + $0x30] sm:$0xff]  ;;  %v2743_v58 = vld [vmem:[#allocation4 + $0x28] sm:$0xff] }
0x119a   :  { %3743 = vmatprep.mubr.msk.f32.mxu0 %vm519_vm13, %v2160_v60 }
0x119b   :  { %3744 = vmatmul.mubr.msk.f32.vlgmr.msra.gmra.mxu0 %vm519_vm13, %v2165_v62 }
0x119c   :  { %3754 = vmatpush3.msra.mxu0 %v2533_v59  ;;  %v2856_v59 = vld [vmem:[#allocation6 + $0x104] sm:$0xff] }
0x119d   :  { %v3738_v63 = vpop.f32.mrf.mxu1  ;;  %3755 = vmatprep.subr.mxu0 %v2532_v30 }
0x119e   :  { %v2335_v1 = vadd.f32 %v3738_v63, %v3272_v47  ;;  %3756 = vmatpush3.msra.mxu0 %v2532_v30 }
0x119f   :  { %v2329_v5 = vpop.f32.mrf.mxu1 }
0x11a0   :  { %v2330_v6 = vadd.f32 %v3272_v47, %v2329_v5  ;;  %3746 = vmatprep.subr.mxu1 %v2335_v1 }
0x11a1   :  { %3747 = vmatpush3.msra.mxu1 %v2335_v1 }
0x11a2   :  { %3748 = vmatprep.subr.mxu1 %v2330_v6 }
0x11a3   :  { %3749 = vmatpush3.msra.mxu1 %v2330_v6 }
0x11a4   :  { %3760 = vmatprep.subr.mxu1 %v2082_v35 }
0x125b   :  { %v3745_v48 = vpop.f32.mrf.mxu0 }
0x125c   :  { %v2426_v28 = vmul.f32 0.25, %v3745_v48  ;;  %v3286_v48 = vld [vmem:[#allocation6 + $0x164] ss:$0 sm:$0xff] }
0x125d   :  { %v2416_v7 = vpop.f32.mrf.mxu0 }
0x125e   :  { %v2425_v8 = vmul.f32 0.25, %v2416_v7  ;;  %v2428_v9 = vsel %vm4138_vm3, %v2426_v28, -1e+30 }
0x125f   :  { %v2432_v29 = vsel %vm519_vm13, %v2428_v9, -inf }
0x1260   :  { %2433 = vmax.xlane.f32.xlu0 %v2432_v29  ;;  %v2427_v10 = vsel %vm4134_vm2, %v2425_v8, -1e+30  ;;  %v3287_v29 = vld [vmem:[#allocation6 + $0x165] ss:$0 sm:$0xff] }
0x1261   :  { %v2429_v11 = vsel %vm519_vm13, %v2427_v10, -inf }
0x1262   :  { %2430 = vmax.xlane.f32.xlu1 %v2429_v11 }
0x12e9   :  { %v2434_v12 = vpop.xlane.xlu0 %2433 }
0x12ea   :  { %v2436_v13 = vsub.f32 %v2428_v9, %v2434_v12 }
0x12eb   :  { %v2431_v14 = vpop.xlane.xlu1 %2430 }
0x12ec   :  { %v2439_v15 = vmul.f32 1.442695, %v2436_v13  ;;  %v2435_v17 = vsub.f32 %v2427_v10, %v2431_v14  ;;  %v2866_v13 = vld [vmem:[#allocation6 + $0x154] sm:$0xff]  ;;  %v2865_v14 = vld [vmem:[#allocation6 + $0x14c] sm:$0xff] }
0x12ee   :  { %3901 = vpow2.f32 %v2439_v15  ;;  %v2437_v18 = vmul.f32 1.442695, %v2435_v17  ;;  %v2864_v15 = vld [vmem:[#allocation6 + $0x144] sm:$0xff]  ;;  %v2863_v17 = vld [vmem:[#allocation6 + $0x13c] sm:$0xff] }
0x12f0   :  { %3903 = vpow2.f32 %v2437_v18  ;;  %v2862_v18 = vld [vmem:[#allocation6 + $0x134] sm:$0xff] }
0x12fb   :  { %v3902_v19 = vpop.eup %3901 }
0x12fc   :  { %v2444_v38 = vsel %vm519_vm13, %v3902_v19, 0.0 }
0x12fd   :  { %v3904_v3 = vpop.eup %3903  ;;  %2445 = vadd.xlane.f32.xlu0 %v2444_v38  ;;  %v2860_v38 = vld [vmem:[#allocation6 + $0x124] sm:$0xff] }
0x12fe   :  { %v2441_v21 = vsel %vm519_vm13, %v3904_v3, 0.0 }
0x12ff   :  { %2442 = vadd.xlane.f32.xlu1 %v2441_v21  ;;  %v2858_v21 = vld [vmem:[#allocation6 + $0x114] sm:$0xff] }
0x1386   :  { %v2446_v22 = vpop.xlane.xlu0 %2445 }
0x1387   :  { %3905 = vrcp.f32 %v2446_v22  ;;  %v2855_v22 = vld [vmem:[#allocation6 + $0xfc] sm:$0xff] }
0x1388   :  { %v2443_v23 = vpop.xlane.xlu1 %2442 }
0x1389   :  { %3907 = vrcp.f32 %v2443_v23  ;;  %v2854_v23 = vld [vmem:[#allocation6 + $0xf4] sm:$0xff] }
0x1394   :  { %v3906_v24 = vpop.eup %3905 }
0x1395   :  { %v2450_v26 = vmul.f32 %v3906_v24, %v3902_v19  ;;  %v2861_v19 = vld [vmem:[#allocation6 + $0x12c] sm:$0xff] }
0x1396   :  { %v3908_v61 = vpop.eup %3907  ;;  %v2853_v24 = vld [vmem:[#allocation6 + $0xec] sm:$0xff] }
0x1397   :  { %v2449_v25 = vmul.f32 %v3908_v61, %v3904_v3  ;;  %v2859_v3 = vld [vmem:[#allocation6 + $0x11c] sm:$0xff]  ;;  %v2852_v61 = vld [vmem:[#allocation6 + $0xe4] sm:$0xff] }
0x1399   :  { %3750 = vmatprep.mubr.msk.f32.mxu1 %vm519_vm13, %v2449_v25  ;;  %v2851_v25 = vld [vmem:[#allocation6 + $0xdc] sm:$0xff] }
0x139a   :  { %3751 = vmatmul.mubr.msk.f32.vlgmr.msra.gmra.mxu1 %vm519_vm13, %v2450_v26  ;;  %v3288_v26 = vld [vmem:[#allocation4 + $0x48] ss:$0 sm:$0xff] }
0x139b   :  { %3761 = vmatpush3.msra.mxu1 %v2082_v35  ;;  %3764 = vmatprep.mubr.msk.f32.mxu1 %vm519_vm13, %v2072_v55  ;;  %v2746_v55 = vld [vmem:[#allocation4 + $0x40] sm:$0xff] }
0x139c   :  { %3762 = vmatprep.subr.mxu1 %v2081_v27  ;;  %3767 = vmatprep.subr.mxu0 %v2746_v55  ;;  %v2857_v35 = vld [vmem:[#allocation6 + $0x10c] sm:$0xff] }
0x139d   :  { %3763 = vmatpush3.msra.mxu1 %v2081_v27 }
0x139e   :  { %3765 = vmatmul.mubr.msk.f32.vlgmr.msra.gmra.mxu1 %vm519_vm13, %v3705_v54  ;;  %3778 = vmatprep.subr.mxu1 %v2866_v13 }
0x139f   :  { %3779 = vmatpush3.msra.mxu1 %v2866_v13 }
0x13a0   :  { %3780 = vmatprep.subr.mxu1 %v2865_v14 }
0x13a1   :  { %3781 = vmatpush3.msra.mxu1 %v2865_v14 }
0x13a2   :  { %3782 = vmatprep.subr.mxu1 %v2864_v15 }
0x13a3   :  { %3783 = vmatpush3.msra.mxu1 %v2864_v15 }
0x13a4   :  { %3784 = vmatprep.subr.mxu1 %v2863_v17 }
0x13a5   :  { %3785 = vmatpush3.msra.mxu1 %v2863_v17 }
0x13a6   :  { %3786 = vmatprep.subr.mxu1 %v2862_v18 }
0x13a7   :  { %3787 = vmatpush3.msra.mxu1 %v2862_v18 }
0x13a8   :  { %3788 = vmatprep.subr.mxu1 %v2861_v19 }
0x13a9   :  { %3789 = vmatpush3.msra.mxu1 %v2861_v19 }
0x13aa   :  { %3790 = vmatprep.subr.mxu1 %v2860_v38 }
0x13ab   :  { %3791 = vmatpush3.msra.mxu1 %v2860_v38  ;;  %v3292_v38 = vld [vmem:[#allocation6 + $0x168] ss:$0 sm:$0xff] }
0x13ac   :  { %3792 = vmatprep.subr.mxu1 %v2859_v3 }
0x13ad   :  { %3793 = vmatpush3.msra.mxu1 %v2859_v3 }
0x13ae   :  { %3794 = vmatprep.subr.mxu1 %v2858_v21 }
0x13af   :  { %3795 = vmatpush3.msra.mxu1 %v2858_v21 }
0x13b0   :  { %3796 = vmatprep.subr.mxu1 %v2857_v35 }
0x13b1   :  { %3797 = vmatpush3.msra.mxu1 %v2857_v35  ;;  %v3293_v35 = vld [vmem:[#allocation6 + $0x169] ss:$0 sm:$0xff] }
0x13b2   :  { %3798 = vmatprep.subr.mxu1 %v2856_v59 }
0x13b3   :  { %3799 = vmatpush3.msra.mxu1 %v2856_v59 }
0x13b4   :  { %3800 = vmatprep.subr.mxu1 %v2855_v22 }
0x13b5   :  { %3801 = vmatpush3.msra.mxu1 %v2855_v22 }
0x13b6   :  { %3802 = vmatprep.subr.mxu1 %v2854_v23 }
0x13b7   :  { %3803 = vmatpush3.msra.mxu1 %v2854_v23 }
0x13b8   :  { %3804 = vmatprep.subr.mxu1 %v2853_v24 }
0x13b9   :  { %3805 = vmatpush3.msra.mxu1 %v2853_v24 }
0x13ba   :  { %3806 = vmatprep.subr.mxu1 %v2852_v61 }
0x13bb   :  { %3807 = vmatpush3.msra.mxu1 %v2852_v61 }
0x13bc   :  { %3808 = vmatprep.subr.mxu1 %v2851_v25 }
0x13bd   :  { %3809 = vmatpush3.msra.mxu1 %v2851_v25  ;;  %v3005_v25 = vld [vmem:[#allocation7 + $0x71] sm:$0xff] }
0x145a   :  { %v3752_v31 = vpop.f32.mrf.mxu1 }
0x145c   :  { %v2523_v32 = vpop.f32.mrf.mxu1 }
0x145d   :  { %3757 = vmatprep.mubr.msk.f32.mxu0 %vm519_vm13, %v2523_v32 }
0x145e   :  { %3758 = vmatmul.mubr.msk.f32.vlgmr.msra.gmra.mxu0 %vm519_vm13, %v3752_v31  ;;  %v3766_v33 = vpop.f32.mrf.mxu1 }
0x145f   :  { %3768 = vmatpush3.msra.mxu0 %v2746_v55 }
0x1460   :  { %v2687_v37 = vpop.f32.mrf.mxu1  ;;  %3769 = vmatprep.subr.mxu0 %v2745_v56 }
0x1461   :  { %3770 = vmatpush3.msra.mxu0 %v2745_v56 }
0x1462   :  { %3771 = vmatprep.subr.mxu0 %v2744_v57 }
0x1463   :  { %3772 = vmatpush3.msra.mxu0 %v2744_v57 }
0x1464   :  { %3773 = vmatprep.subr.mxu0 %v2743_v58 }
0x1465   :  { %3774 = vmatpush3.msra.mxu0 %v2743_v58 }
0x151e   :  { %v3759_v34 = vpop.f32.mrf.mxu0 }
0x151f   :  { %v2693_v36 = vadd.f32 %v3766_v33, %v3759_v34 }
0x1520   :  { %v2606_v2 = vpop.f32.mrf.mxu0 }
0x1521   :  { %v2697_v40 = vadd.f32 %v2693_v36, %v4203_v0  ;;  %v2688_v4 = vadd.f32 %v2687_v37, %v2606_v2 }
0x1523   :  { %v4281_v20 = vadd.f32 %v3285_v39, %v2697_v40  ;;  %v2696_v41 = vadd.f32 %v2688_v4, %v4206_v16 }
0x1525   :  { %v4284_v42 = vadd.f32 %v3285_v39, %v2696_v41  ;;  %v2707_v43 = vsel %vm219_vm12, %v4281_v20, 0.0 }
0x1526   :  { %2708 = vadd.xlane.f32.xlu0 %v2707_v43 }
0x1527   :  { %v2704_v44 = vsel %vm219_vm12, %v4284_v42, 0.0 }
0x1528   :  { %2705 = vadd.xlane.f32.xlu1 %v2704_v44 }
0x15af   :  { %v2709_v45 = vpop.xlane.xlu0 %2708 }
0x15b0   :  { %v2711_v46 = vmul.f32 0.03125, %v2709_v45 }
0x15b1   :  { %v2706_v49 = vpop.xlane.xlu1 %2705 }
0x15b2   :  { %v2713_v0 = vsub.f32 %v4281_v20, %v2711_v46  ;;  %v2710_v50 = vmul.f32 0.03125, %v2706_v49 }
0x15b4   :  { %v2712_v51 = vsub.f32 %v4284_v42, %v2710_v50  ;;  %v2715_v52 = vmul.f32 %v2713_v0, %v2713_v0 }
0x15b6   :  { %v2719_v16 = vsel %vm219_vm12, %v2715_v52, 0.0  ;;  %v2714_v53 = vmul.f32 %v2712_v51, %v2712_v51 }
0x15b7   :  { %2720 = vadd.xlane.f32.xlu0 %v2719_v16 }
0x15b8   :  { %v2716_v54 = vsel %vm219_vm12, %v2714_v53, 0.0  ;;  %v3291_v53 = vld [vmem:[#allocation6 + $0x167] ss:$0 sm:$0xff] }
0x15b9   :  { %2717 = vadd.xlane.f32.xlu1 %v2716_v54 }
0x1640   :  { %v2721_v60 = vpop.xlane.xlu0 %2720 }
0x1641   :  { %v2723_v62 = vmul.f32 0.03125, %v2721_v60 }
0x1642   :  { %v2718_v47 = vpop.xlane.xlu1 %2717 }
0x1643   :  { %v2725_v63 = vadd.f32 1e-05, %v2723_v62  ;;  %v2722_v1 = vmul.f32 0.03125, %v2718_v47 }
0x1645   :  { %3909 = vrsqrt.f32 %v2725_v63  ;;  %v2724_v5 = vadd.f32 1e-05, %v2722_v1 }
0x1647   :  { %3911 = vrsqrt.f32 %v2724_v5 }
0x1652   :  { %v3910_v6 = vpop.eup %3909 }
0x1653   :  { %v2729_v28 = vmul.f32 %v3910_v6, %v2713_v0 }
0x1654   :  { %v3912_v7 = vpop.eup %3911 }
0x1655   :  { %v2728_v8 = vmul.f32 %v3912_v7, %v2712_v51  ;;  %v2735_v9 = vmul.f32 %v3286_v48, %v2729_v28 }
0x1657   :  { %v2734_v10 = vmul.f32 %v3286_v48, %v2728_v8  ;;  %v2741_v12 = vadd.f32 %v3287_v29, %v2735_v9  ;;  %v2993_v8 = vld [vmem:[#allocation7 + $0x18] sm:$0xff]  ;;  %v2992_v9 = vld [vmem:[#allocation7 + $0x10] sm:$0xff] }
0x1658   :  { %3813 = vmatprep.subr.mxu0 %v2993_v8 }
0x1659   :  { %v2740_v11 = vadd.f32 %v3287_v29, %v2734_v10  ;;  %v2991_v29 = vld [vmem:[#allocation7 + $0x8] sm:$0xff]  ;;  %v2990_v10 = vld [vmem:[#allocation7] sm:$0xff] }
0x165b   :  { %3775 = vmatprep.mubr.msk.f32.mxu0 %vm219_vm12, %v2740_v11  ;;  %v3006_v11 = vld [vmem:[#allocation7 + $0x79] sm:$0xff] }
0x165c   :  { %3776 = vmatmul.mubr.msk.f32.vlgmr.msra.gmra.mxu0 %vm219_vm12, %v2741_v12 }
0x165d   :  { %3814 = vmatpush3.msra.mxu0 %v2993_v8 }
0x165e   :  { %3815 = vmatprep.subr.mxu0 %v2992_v9 }
0x165f   :  { %3816 = vmatpush3.msra.mxu0 %v2992_v9 }
0x1660   :  { %3817 = vmatprep.subr.mxu0 %v2991_v29 }
0x1661   :  { %3818 = vmatpush3.msra.mxu0 %v2991_v29 }
0x1662   :  { %3819 = vmatprep.subr.mxu0 %v2990_v10 }
0x1663   :  { %3820 = vmatpush3.msra.mxu0 %v2990_v10 }
0x1664   :  { %3824 = vmatprep.subr.mxu0 %v3006_v11 }
0x171c   :  { %v3777_v27 = vpop.f32.mrf.mxu0 }
0x171d   :  { %v2830_v30 = vadd.f32 %v3777_v27, %v3288_v26  ;;  %v3003_v27 = vld [vmem:[#allocation7 + $0x61] sm:$0xff] }
0x171e   :  { %v2824_v31 = vpop.f32.mrf.mxu0 }
0x171f   :  { %v2834_v32 = vmul.f32 %v2830_v30, %v2830_v30  ;;  %v2825_v33 = vadd.f32 %v3288_v26, %v2824_v31  ;;  %v3004_v26 = vld [vmem:[#allocation7 + $0x69] sm:$0xff]  ;;  %v3001_v31 = vld [vmem:[#allocation7 + $0x51] sm:$0xff] }
0x1721   :  { %v2836_v34 = vmul.f32 %v2834_v32, %v2830_v30  ;;  %v2833_v36 = vmul.f32 %v2825_v33, %v2825_v33  ;;  %v3000_v32 = vld [vmem:[#allocation7 + $0x49] sm:$0xff] }
0x1723   :  { %v2838_v37 = vmul.f32 0.044715, %v2836_v34  ;;  %v2835_v39 = vmul.f32 %v2833_v36, %v2825_v33  ;;  %v2998_v34 = vld [vmem:[#allocation7 + $0x39] sm:$0xff]  ;;  %v2997_v36 = vld [vmem:[#allocation7 + $0x31] sm:$0xff] }
0x1725   :  { %v2840_v2 = vadd.f32 %v2838_v37, %v2830_v30  ;;  %v2837_v40 = vmul.f32 0.044715, %v2835_v39  ;;  %v2996_v37 = vld [vmem:[#allocation7 + $0x29] sm:$0xff]  ;;  %v2995_v39 = vld [vmem:[#allocation7 + $0x21] sm:$0xff] }
0x1727   :  { %v2842_v4 = vmul.f32 0.7978846, %v2840_v2  ;;  %v2839_v41 = vadd.f32 %v2837_v40, %v2825_v33  ;;  %v3294_v2 = vld [vmem:[#allocation7 + $0x20] ss:$0 sm:$0xff] }
0x1729   :  { %3913 = vtanh.f32 %v2842_v4  ;;  %v2841_v43 = vmul.f32 0.7978846, %v2839_v41 }
0x172b   :  { %3915 = vtanh.f32 %v2841_v43 }
0x1736   :  { %v3914_v44 = vpop.eup %3913 }
0x1737   :  { %v2846_v45 = vadd.f32 1.0, %v3914_v44 }
0x1738   :  { %v3916_v46 = vpop.eup %3915 }
0x1739   :  { %v2845_v49 = vadd.f32 1.0, %v3916_v46  ;;  %v2848_v0 = vmul.f32 0.5, %v2846_v45  ;;  %v3297_v46 = vld [vmem:[#allocation7 + $0x81] ss:$0 sm:$0xff] }
0x173b   :  { %v2847_v50 = vmul.f32 0.5, %v2845_v49  ;;  %v2850_v52 = vmul.f32 %v2848_v0, %v2830_v30  ;;  %v3002_v30 = vld [vmem:[#allocation7 + $0x59] sm:$0xff] }
0x173d   :  { %v2849_v51 = vmul.f32 %v2847_v50, %v2825_v33  ;;  %v2999_v33 = vld [vmem:[#allocation7 + $0x41] sm:$0xff] }
0x173f   :  { %3810 = vmatprep.mubr.f32.mxu1 %v2849_v51 }
0x1740   :  { %3811 = vmatmul.mubr.f32.vlgmr.msra.gmra.mxu1 %v2850_v52 }
0x1800   :  { %v3812_v16 = vpop.f32.mrf.mxu1 }
0x1801   :  { %v2943_v54 = vadd.f32 %v3812_v16, %v4281_v20 }
0x1802   :  { %v2933_v55 = vpop.f32.mrf.mxu1 }
0x1803   :  { %v2942_v56 = vadd.f32 %v2933_v55, %v4284_v42  ;;  %v2949_v57 = vadd.f32 %v3291_v53, %v2943_v54 }
0x1805   :  { %v2955_v58 = vsel %vm219_vm12, %v2949_v57, 0.0  ;;  %v2948_v60 = vadd.f32 %v3291_v53, %v2942_v56 }
0x1806   :  { %2956 = vadd.xlane.f32.xlu0 %v2955_v58 }
0x1807   :  { %v2952_v62 = vsel %vm219_vm12, %v2948_v60, 0.0 }
0x1808   :  { %2953 = vadd.xlane.f32.xlu1 %v2952_v62 }
0x188f   :  { %v2957_v47 = vpop.xlane.xlu0 %2956 }
0x1890   :  { %v2959_v63 = vmul.f32 0.03125, %v2957_v47 }
0x1891   :  { %v2954_v1 = vpop.xlane.xlu1 %2953 }
0x1892   :  { %v2961_v5 = vsub.f32 %v2949_v57, %v2959_v63  ;;  %v2958_v6 = vmul.f32 0.03125, %v2954_v1 }
0x1894   :  { %v2960_v48 = vsub.f32 %v2948_v60, %v2958_v6  ;;  %v2963_v28 = vmul.f32 %v2961_v5, %v2961_v5 }
0x1896   :  { %v2967_v20 = vsel %vm219_vm12, %v2963_v28, 0.0  ;;  %v2962_v7 = vmul.f32 %v2960_v48, %v2960_v48 }
0x1897   :  { %2968 = vadd.xlane.f32.xlu0 %v2967_v20 }
0x1898   :  { %v2964_v42 = vsel %vm219_vm12, %v2962_v7, 0.0 }
0x1899   :  { %2965 = vadd.xlane.f32.xlu1 %v2964_v42 }
0x1920   :  { %v2969_v12 = vpop.xlane.xlu0 %2968 }
0x1921   :  { %v2971_v13 = vmul.f32 0.03125, %v2969_v12 }
0x1922   :  { %v2966_v14 = vpop.xlane.xlu1 %2965 }
0x1923   :  { %v2973_v15 = vadd.f32 1e-05, %v2971_v13  ;;  %v2970_v17 = vmul.f32 0.03125, %v2966_v14 }
0x1925   :  { %3917 = vrsqrt.f32 %v2973_v15  ;;  %v2972_v18 = vadd.f32 1e-05, %v2970_v17 }
0x1927   :  { %3919 = vrsqrt.f32 %v2972_v18 }
0x1932   :  { %v3918_v19 = vpop.eup %3917 }
0x1933   :  { %v2977_v3 = vmul.f32 %v3918_v19, %v2961_v5 }
0x1934   :  { %v3920_v21 = vpop.eup %3919 }
0x1935   :  { %v2976_v59 = vmul.f32 %v3920_v21, %v2960_v48  ;;  %v2983_v22 = vmul.f32 %v3292_v38, %v2977_v3 }
0x1937   :  { %v2982_v23 = vmul.f32 %v3292_v38, %v2976_v59  ;;  %v2989_v24 = vadd.f32 %v3293_v35, %v2983_v22 }
0x1939   :  { %v2988_v61 = vadd.f32 %v3293_v35, %v2982_v23  ;;  %3182 = vst.msk [vmem:[%s4323_s5 + $0x8] sm:$0xff] %vm219_vm12, %v2989_v24 }
0x193b   :  { %3821 = vmatprep.mubr.msk.f32.mxu0 %vm219_vm12, %v2988_v61  ;;  %3181 = vst.msk [vmem:[%s4323_s5] sm:$0xff] %vm219_vm12, %v2988_v61 }
0x193c   :  { %3822 = vmatmul.mubr.msk.f32.vlgmr.msra.gmra.mxu0 %vm219_vm12, %v2989_v24 }
0x193d   :  { %3825 = vmatpush3.msra.mxu0 %v3006_v11 }
0x193e   :  { %3826 = vmatprep.subr.mxu0 %v3005_v25 }
0x193f   :  { %3827 = vmatpush3.msra.mxu0 %v3005_v25 }
0x1940   :  { %3828 = vmatprep.subr.mxu0 %v3004_v26 }
0x1941   :  { %3829 = vmatpush3.msra.mxu0 %v3004_v26 }
0x1942   :  { %3830 = vmatprep.subr.mxu0 %v3003_v27 }
0x1943   :  { %3831 = vmatpush3.msra.mxu0 %v3003_v27 }
0x1944   :  { %3832 = vmatprep.subr.mxu0 %v3002_v30 }
0x1945   :  { %3833 = vmatpush3.msra.mxu0 %v3002_v30 }
0x1946   :  { %3834 = vmatprep.subr.mxu0 %v3001_v31 }
0x1947   :  { %3835 = vmatpush3.msra.mxu0 %v3001_v31 }
0x1948   :  { %3836 = vmatprep.subr.mxu0 %v3000_v32 }
0x1949   :  { %3837 = vmatpush3.msra.mxu0 %v3000_v32 }
0x194a   :  { %3838 = vmatprep.subr.mxu0 %v2999_v33 }
0x194b   :  { %3839 = vmatpush3.msra.mxu0 %v2999_v33 }
0x194c   :  { %3840 = vmatprep.subr.mxu0 %v2998_v34 }
0x194d   :  { %3841 = vmatpush3.msra.mxu0 %v2998_v34 }
0x194e   :  { %3842 = vmatprep.subr.mxu0 %v2997_v36 }
0x194f   :  { %3843 = vmatpush3.msra.mxu0 %v2997_v36 }
0x1950   :  { %3844 = vmatprep.subr.mxu0 %v2996_v37 }
0x1951   :  { %3845 = vmatpush3.msra.mxu0 %v2996_v37 }
0x1952   :  { %3846 = vmatprep.subr.mxu0 %v2995_v39 }
0x1953   :  { %3847 = vmatpush3.msra.mxu0 %v2995_v39 }
0x19fc   :  { %v3823_v40 = vpop.f32.mrf.mxu0 }
0x19fd   :  { %v3090_v4 = vadd.f32 %v3823_v40, %v3294_v2 }
0x19fe   :  { %v3084_v41 = vpop.f32.mrf.mxu0 }
0x19ff   :  { %v3085_v43 = vadd.f32 %v3294_v2, %v3084_v41  ;;  %v3094_v45 = vmax.f32 %v3090_v4, 0.0 }
0x1a01   :  { %v3093_v44 = vmax.f32 %v3085_v43, 0.0 }
0x1a03   :  { %3848 = vmatprep.mubr.msk.f32.mxu0 %vm3099_vm4, %v3093_v44 }
0x1a04   :  { %3849 = vmatmul.mubr.msk.f32.vlgmr.msra.gmra.mxu0 %vm3099_vm4, %v3094_v45 }
0x1ac4   :  { %v3850_v49 = vpop.f32.mrf.mxu0 }
0x1ac5   :  { %v3178_v0 = vadd.f32 %v3850_v49, %v3297_v46 }
0x1ac6   :  { %v3172_v50 = vpop.f32.mrf.mxu0 }
0x1ac7   :  { %v3173_v51 = vadd.f32 %v3297_v46, %v3172_v50  ;;  %3187 = vrot.lane.b32.xlu0 %v3178_v0, %s4015_s18 }
0x1ac9   :  { %3185 = vrot.lane.b32.xlu1 %v3173_v51, %s4015_s18 }
0x1b39   :  { %v3188_v52 = vpop.permute.xlu0 %3187 }
0x1b3a   :  { %3193 = vst.msk [vmem:[%s4323_s5 + $0x8] sm:$0xff] %vm3191_vm5, %v3188_v52 }
0x1b3b   :  { %v3186_v16 = vpop.permute.xlu1 %3185 }
0x1b3c   :  { %3192 = vst.msk [vmem:[%s4323_s5] sm:$0xff] %vm3191_vm5, %v3186_v16 }
0x1b3d   :  { %3198 = vsyncpa [#allocation3], 1 }
0x1b3e   :  { %3199 = vsyncpa [#allocation5], 1 }
0x1b3f   :  { %3200 = vsyncpa [#allocation8], 1 }

</bundles_post_ra>
